<compile_context>
chip_gen: v7x
topology: tpu7x:2x2x1
jax: 0.10.0
libtpu: 0.0.40
codegen_flags: <defaults>
</compile_context>

<pallas_src>
import functools
import math

import jax
import jax.numpy as jnp
import numpy as np
from jax.experimental import pallas as pl
from jax.experimental.pallas import tpu as pltpu


# ----------------------------------------------------------------------------
# Kernels
# ----------------------------------------------------------------------------
def gcn_layer1_kernel(adj_ref, deg_ref, w1_ref, b1_ref, h1_ref, acc_ref):
    """GCN layer with a scalar (in-degree) input feature.

    grid = (dest tiles i [parallel], source tiles k [arbitrary/reduction]).
    adj block: (tn, tk) bf16;  deg: lane-dense (1, tk) f32 row.
    """
    k = pl.program_id(1)

    @pl.when(k == 0)
    def _init():
        acc_ref[...] = jnp.zeros_like(acc_ref)

    # Mean aggregation of the scalar feature: VPU multiply + XLU lane-reduce.
    # (An MXU (tn,tk)@(tk,1) matvec would waste the entire output dimension
    # of the systolic array.)
    adj = adj_ref[...].astype(jnp.float32)          # (tn, tk)
    deg = deg_ref[...]                              # (1, tk) f32
    acc_ref[...] += jnp.sum(adj * deg, axis=-1, keepdims=True)   # (tn, 1)

    @pl.when(k == pl.num_programs(1) - 1)
    def _finalize():
        # Linear(1, H) is a K=1 contraction -> VPU broadcast outer product
        # (per perf review), then bias + relu.  Lane dim padded to 128.
        h = acc_ref[...] * w1_ref[...] + b1_ref[...]              # (tn, HP)
        h1_ref[...] = jnp.maximum(h, 0.0).astype(h1_ref.dtype)    # bf16 out


def gcn_layer2_kernel(adj_ref, h_ref, w2_ref, b2_ref, h2_ref, acc_ref):
    """GCN layer with a dense hidden feature; bf16 MXU aggregation, f32 acc."""
    k = pl.program_id(1)

    @pl.when(k == 0)
    def _init():
        acc_ref[...] = jnp.zeros_like(acc_ref)

    # bf16 operands halve adj HBM traffic and double MXU throughput;
    # accumulation stays in f32.
    acc_ref[...] += jnp.dot(adj_ref[...], h_ref[...],
                            preferred_element_type=jnp.float32)

    @pl.when(k == pl.num_programs(1) - 1)
    def _finalize():
        h = jnp.dot(acc_ref[...], w2_ref[...],
                    preferred_element_type=jnp.float32) + b2_ref[...]
        h2_ref[...] = jnp.maximum(h, 0.0).astype(h2_ref.dtype)


def readout_classify_kernel(memb_ref, h_ref, wc_ref, bc_ref, out_ref, acc_ref):
    """dgl.mean_nodes (segment-mean matrix) + classifier Linear.

    grid = (source node tiles k,).  Output is a lane-dense (GP, 128) block.
    """
    k = pl.program_id(0)

    @pl.when(k == 0)
    def _init():
        acc_ref[...] = jnp.zeros_like(acc_ref)

    acc_ref[...] += jnp.dot(memb_ref[...], h_ref[...],
                            preferred_element_type=jnp.float32)

    @pl.when(k == pl.num_programs(0) - 1)
    def _finalize():
        out_ref[...] = (jnp.dot(acc_ref[...], wc_ref[...],
                                preferred_element_type=jnp.float32)
                        + bc_ref[...])


# ----------------------------------------------------------------------------
# Wrapper
# ----------------------------------------------------------------------------
def _round_up(x, m):
    return (x + m - 1) // m * m


def _pad2(x, rows, cols):
    return jnp.pad(x, ((0, rows - x.shape[0]), (0, cols - x.shape[1])))


def classifier_forward(deg_feat, adj_norm, memb, params, *, tn=256, tk=512):
    """Full Classifier forward: 2x GCN + per-graph mean readout + Linear.

    deg_feat: (N, 1) f32 in-degrees.  adj_norm: (N, N) f32 row-normalized
    adjacency.  memb: (G, N) f32 per-graph mean-readout matrix.
    tn / tk: destination / source node tile sizes (tn % 8 == 0, tk % 128 == 0).
    """
    w1, b1, w2, b2, wc, bc = params
    assert w1.shape[0] == 1, "module feeds scalar in-degrees => in_dim == 1"
    assert tn % 8 == 0 and tk % 128 == 0

    N = adj_norm.shape[0]
    G = memb.shape[0]
    H = w1.shape[1]
    C = wc.shape[1]

    HP = _round_up(H, 128)            # hidden padded to full lanes
    CP = _round_up(C, 128)            # classes padded -> unmasked vst
    GP = _round_up(G, 8)              # graphs padded to full sublanes
    NP = _round_up(N, math.lcm(tn, tk))
    gi, gk = NP // tn, NP // tk

    # ---- pad & cast (one O(N^2) bf16 cast of adj, reused by both layers) ----
    adj_p = _pad2(adj_norm, NP, NP).astype(jnp.bfloat16)
    deg_row = _pad2(deg_feat.reshape(1, -1), 1, NP).astype(jnp.float32)
    memb_p = _pad2(memb, GP, NP).astype(jnp.float32)
    w1p = _pad2(w1, 1, HP).astype(jnp.float32)
    b1p = _pad2(b1.reshape(1, -1), 1, HP).astype(jnp.float32)
    w2p = _pad2(w2, HP, HP).astype(jnp.float32)
    b2p = _pad2(b2.reshape(1, -1), 1, HP).astype(jnp.float32)
    wcp = _pad2(wc, HP, CP).astype(jnp.float32)
    bcp = _pad2(bc.reshape(1, -1), 1, CP).astype(jnp.float32)

    gcn_dims = pltpu.CompilerParams(
        dimension_semantics=("parallel", "arbitrary"))

    # ---- GCN layer 1: h1 = relu((adj @ deg) * W1 + b1), bf16 output ----
    h1 = pl.pallas_call(
        gcn_layer1_kernel,
        out_shape=jax.ShapeDtypeStruct((NP, HP), jnp.bfloat16),
        grid_spec=pltpu.PrefetchScalarGridSpec(
            num_scalar_prefetch=0,
            grid=(gi, gk),
            in_specs=[
                pl.BlockSpec((tn, tk), lambda i, k: (i, k)),   # adj tile
                pl.BlockSpec((1, tk), lambda i, k: (0, k)),    # deg row
                pl.BlockSpec((1, HP), lambda i, k: (0, 0)),    # W1 (1, HP)
                pl.BlockSpec((1, HP), lambda i, k: (0, 0)),    # b1
            ],
            out_specs=pl.BlockSpec((tn, HP), lambda i, k: (i, 0)),
            scratch_shapes=[pltpu.VMEM((tn, 1), jnp.float32)],
        ),
        compiler_params=gcn_dims,
    )(adj_p, deg_row, w1p, b1p)

    # ---- GCN layer 2: h2 = relu((adj @ h1) @ W2 + b2), f32 output ----
    h2 = pl.pallas_call(
        gcn_layer2_kernel,
        out_shape=jax.ShapeDtypeStruct((NP, HP), jnp.float32),
        grid_spec=pltpu.PrefetchScalarGridSpec(
            num_scalar_prefetch=0,
            grid=(gi, gk),
            in_specs=[
                pl.BlockSpec((tn, tk), lambda i, k: (i, k)),   # adj tile
                pl.BlockSpec((tk, HP), lambda i, k: (k, 0)),   # h1 tile (bf16)
                pl.BlockSpec((HP, HP), lambda i, k: (0, 0)),   # W2
                pl.BlockSpec((1, HP), lambda i, k: (0, 0)),    # b2
            ],
            out_specs=pl.BlockSpec((tn, HP), lambda i, k: (i, 0)),
            scratch_shapes=[pltpu.VMEM((tn, HP), jnp.float32)],
        ),
        compiler_params=gcn_dims,
    )(adj_p, h1, w2p, b2p)

    # ---- mean readout + classify: out = (memb @ h2) @ Wc + bc ----
    out_p = pl.pallas_call(
        readout_classify_kernel,
        out_shape=jax.ShapeDtypeStruct((GP, CP), jnp.float32),
        grid_spec=pltpu.PrefetchScalarGridSpec(
            num_scalar_prefetch=0,
            grid=(gk,),
            in_specs=[
                pl.BlockSpec((GP, tk), lambda k: (0, k)),      # memb tile
                pl.BlockSpec((tk, HP), lambda k: (k, 0)),      # h2 tile
                pl.BlockSpec((HP, CP), lambda k: (0, 0)),      # Wc
                pl.BlockSpec((1, CP), lambda k: (0, 0)),       # bc
            ],
            out_specs=pl.BlockSpec((GP, CP), lambda k: (0, 0)),
            scratch_shapes=[pltpu.VMEM((GP, HP), jnp.float32)],
        ),
        compiler_params=pltpu.CompilerParams(
            dimension_semantics=("arbitrary",)),
    )(memb_p, h2, wcp, bcp)

    return out_p[:G, :C]


# ----------------------------------------------------------------------------
# Data / params construction and references
# ----------------------------------------------------------------------------
def init_linear(key, in_f, out_f):
    """PyTorch nn.Linear default init; weight stored as (in, out): y = x@W + b."""
    kw, kb = jax.random.split(key)
    bound = 1.0 / float(np.sqrt(in_f))
    w = jax.random.uniform(kw, (in_f, out_f), jnp.float32, -bound, bound)
    b = jax.random.uniform(kb, (1, out_f), jnp.float32, -bound, bound)
    return w, b


def build_batched_graph(key, sizes, p_edge=0.15):
    """Deterministic random batched graph (block-diagonal dense adjacency)."""
    N = int(sum(sizes))
    rows, off = [], 0
    for s in sizes:                       # no edges across graphs in the batch
        r = jnp.zeros((s, N), jnp.float32).at[:, off:off + s].set(1.0)
        rows.append(r)
        off += s
    mask = jnp.concatenate(rows, axis=0)

    adj = (jax.random.uniform(key, (N, N)) < p_edge).astype(jnp.float32) * mask
    adj = adj * (1.0 - jnp.eye(N, dtype=jnp.float32))   # drop self-loops

    # row = destination, col = source; in_degree = row sum
    deg = adj.sum(axis=1)
    has_in = deg > 0
    adj_norm = jnp.where(has_in[:, None],
                         adj / jnp.maximum(deg, 1.0)[:, None],
                         jnp.eye(N, dtype=jnp.float32))  # isolated: keep own h

    memb_rows, off = [], 0                # per-graph mean-readout matrix (G, N)
    for s in sizes:
        r = jnp.zeros((N,), jnp.float32).at[off:off + s].set(1.0 / s)
        memb_rows.append(r)
        off += s
    memb = jnp.stack(memb_rows)

    deg_feat = deg.reshape(-1, 1).astype(jnp.float32)  # g.in_degrees().view(-1,1)
    return deg_feat, adj_norm, memb


def reference_bf16(deg_feat, adj_norm, memb, params):
    """Pure-JAX reference replicating the kernel's bf16 casts (f32 accumulate)."""
    w1, b1, w2, b2, wc, bc = params
    adj = adj_norm.astype(jnp.bfloat16)
    agg1 = jnp.dot(adj.astype(jnp.float32), deg_feat)                  # (N, 1)
    h1 = jnp.maximum(agg1 * w1 + b1, 0.0).astype(jnp.bfloat16)         # (N, H)
    agg2 = jnp.dot(adj, h1, preferred_element_type=jnp.float32)
    h2 = jnp.maximum(jnp.dot(agg2, w2, preferred_element_type=jnp.float32)
                     + b2, 0.0)
    hg = jnp.dot(memb, h2, preferred_element_type=jnp.float32)
    return jnp.dot(hg, wc, preferred_element_type=jnp.float32) + bc


if __name__ == "__main__":
    key = jax.random.PRNGKey(0)
    kg, k1, k2, k3 = jax.random.split(key, 4)

    # 2 graphs batched, 200 nodes total: padded to 256 so the (2, 2) tile grid
    # and the pl.when accumulate/finalize paths are actually exercised.
    sizes = (90, 110)
    in_dim, hidden_dim, n_classes = 1, 32, 4

    deg_feat, adj_norm, memb = build_batched_graph(kg, sizes, p_edge=0.15)
    w1, b1 = init_linear(k1, in_dim, hidden_dim)
    w2, b2 = init_linear(k2, hidden_dim, hidden_dim)
    wc, bc = init_linear(k3, hidden_dim, n_classes)
    params = (w1, b1, w2, b2, wc, bc)

    # Whole forward under one jit (amortizes pallas_call launch overhead).
    fwd = jax.jit(functools.partial(classifier_forward, tn=128, tk=128))
    out = jax.block_until_ready(fwd(deg_feat, adj_norm, memb, params))

    # Reference 1: same math as the kernel (bf16 adj / h1, f32 accumulation).
    ref_b = reference_bf16(deg_feat, adj_norm, memb, params)
    np.testing.assert_allclose(np.asarray(out), np.asarray(ref_b),
                               rtol=1e-2, atol=1e-2)

    # Reference 2: full-f32 module semantics (loose tolerance: the bf16 cast of
    # adj / layer-1 activations is an intentional perf/accuracy tradeoff).
    h = deg_feat
    h = jnp.maximum((adj_norm @ h) @ w1 + b1, 0.0)
    h = jnp.maximum((adj_norm @ h) @ w2 + b2, 0.0)
    ref_f32 = (memb @ h) @ wc + bc
    np.testing.assert_allclose(np.asarray(out), np.asarray(ref_f32),
                               rtol=1e-1, atol=1.0)

    print("KERNEL_OK")
</pallas_src>

<mosaic_0001>
module attributes {stable_mosaic.version = 11 : i64} {
  func.func @gcn_layer2_kernel(%arg0: i32, %arg1: i32, %arg2: memref<128x128xbf16, #tpu.memory_space<vmem>>, %arg3: memref<128x128xbf16, #tpu.memory_space<vmem>>, %arg4: memref<128x128xf32, #tpu.memory_space<vmem>>, %arg5: memref<1x128xf32, #tpu.memory_space<vmem>>, %arg6: memref<128x128xf32, #tpu.memory_space<vmem>>, %arg7: memref<128x128xf32, #tpu.memory_space<vmem>>) attributes {dimension_semantics = [#tpu.dimension_semantics<parallel>, #tpu.dimension_semantics<arbitrary>], iteration_bounds = array<i64: 2, 2>, scalar_prefetch = 0 : i64, scratch_operands = 1 : i64, tpu.core_type = #tpu.core_type<tc>, window_params = [{transform_indices = @transform_0, window_bounds = array<i64: 128, 128>}, {transform_indices = @transform_1, window_bounds = array<i64: 128, 128>}, {pipeline_mode = #tpu.pipeline_mode<synchronous>, transform_indices = @transform_2, window_bounds = array<i64: 128, 128>}, {pipeline_mode = #tpu.pipeline_mode<synchronous>, transform_indices = @transform_3, window_bounds = array<i64: 1, 128>}, {transform_indices = @transform_4, window_bounds = array<i64: 128, 128>}]} {
    %c0_i32 = arith.constant 0 : i32
    %0 = arith.cmpi eq, %arg1, %c0_i32 : i32
    %1 = arith.extui %0 : i1 to i32
    %c0_i32_0 = arith.constant 0 : i32
    %2 = arith.cmpi ne, %1, %c0_i32_0 : i32
    scf.if %2 {
      %cst_9 = arith.constant 0.000000e+00 : f32
      %12 = vector.broadcast %cst_9 : f32 to vector<128x128xf32>
      %c0_10 = arith.constant 0 : index
      %c0_11 = arith.constant 0 : index
      %13 = vector.load %arg7[%c0_10, %c0_11] : memref<128x128xf32, #tpu.memory_space<vmem>>, vector<128x128xf32>
      tpu.vector_store %arg7[%c0_10, %c0_11], %12 {strides = array<i32>} : memref<128x128xf32, #tpu.memory_space<vmem>>, vector<128x128xf32>,
    } else {
    }
    %c0 = arith.constant 0 : index
    %c0_1 = arith.constant 0 : index
    %3 = vector.load %arg7[%c0, %c0_1] : memref<128x128xf32, #tpu.memory_space<vmem>>, vector<128x128xf32>
    %c0_2 = arith.constant 0 : index
    %c0_3 = arith.constant 0 : index
    %4 = vector.load %arg2[%c0_2, %c0_3] : memref<128x128xbf16, #tpu.memory_space<vmem>>, vector<128x128xbf16>
    %c0_4 = arith.constant 0 : index
    %c0_5 = arith.constant 0 : index
    %5 = vector.load %arg3[%c0_4, %c0_5] : memref<128x128xbf16, #tpu.memory_space<vmem>>, vector<128x128xbf16>
    %cst = arith.constant dense<0.000000e+00> : vector<128x128xf32>
    %6 = tpu.matmul %4, %5, %cst {dimension_numbers = #tpu.dot_dimension_numbers<[1], [0], [0], [1], [0, 0, 1, 1], [], []>} : vector<128x128xbf16>, vector<128x128xbf16>, vector<128x128xf32> -> vector<128x128xf32>
    %7 = arith.addf %3, %6 : vector<128x128xf32>
    %c0_6 = arith.constant 0 : index
    %c0_7 = arith.constant 0 : index
    %8 = vector.load %arg7[%c0_6, %c0_7] : memref<128x128xf32, #tpu.memory_space<vmem>>, vector<128x128xf32>
    tpu.vector_store %arg7[%c0_6, %c0_7], %7 {strides = array<i32>} : memref<128x128xf32, #tpu.memory_space<vmem>>, vector<128x128xf32>,
    %c1_i32 = arith.constant 1 : i32
    %9 = arith.cmpi eq, %arg1, %c1_i32 : i32
    %10 = arith.extui %9 : i1 to i32
    %c0_i32_8 = arith.constant 0 : i32
    %11 = arith.cmpi ne, %10, %c0_i32_8 : i32
    scf.if %11 {
      %c0_9 = arith.constant 0 : index
      %c0_10 = arith.constant 0 : index
      %12 = vector.load %arg7[%c0_9, %c0_10] : memref<128x128xf32, #tpu.memory_space<vmem>>, vector<128x128xf32>
      %c0_11 = arith.constant 0 : index
      %c0_12 = arith.constant 0 : index
      %13 = vector.load %arg4[%c0_11, %c0_12] : memref<128x128xf32, #tpu.memory_space<vmem>>, vector<128x128xf32>
      %cst_13 = arith.constant dense<0.000000e+00> : vector<128x128xf32>
      %14 = tpu.matmul %12, %13, %cst_13 {dimension_numbers = #tpu.dot_dimension_numbers<[1], [0], [0], [1], [0, 0, 1, 1], [], []>} : vector<128x128xf32>, vector<128x128xf32>, vector<128x128xf32> -> vector<128x128xf32>
      %c0_14 = arith.constant 0 : index
      %c0_15 = arith.constant 0 : index
      %15 = vector.load %arg5[%c0_14, %c0_15] : memref<1x128xf32, #tpu.memory_space<vmem>>, vector<1x128xf32>
      %16 = vector.broadcast %15 : vector<1x128xf32> to vector<128x128xf32>
      %17 = arith.addf %14, %16 : vector<128x128xf32>
      %cst_16 = arith.constant 0.000000e+00 : f32
      %18 = vector.broadcast %cst_16 : f32 to vector<128x128xf32>
      %19 = arith.maximumf %17, %18 : vector<128x128xf32>
      %c0_17 = arith.constant 0 : index
      %c0_18 = arith.constant 0 : index
      %20 = vector.load %arg6[%c0_17, %c0_18] : memref<128x128xf32, #tpu.memory_space<vmem>>, vector<128x128xf32>
      tpu.vector_store %arg6[%c0_17, %c0_18], %19 {strides = array<i32>} : memref<128x128xf32, #tpu.memory_space<vmem>>, vector<128x128xf32>,
    } else {
    }
    return
  }
  func.func @transform_0(%arg0: i32, %arg1: i32) -> (i32, i32) {
    %c0_i32 = arith.constant 0 : i32
    return %arg0, %arg1 : i32, i32
  }
  func.func @transform_1(%arg0: i32, %arg1: i32) -> (i32, i32) {
    %c0_i32 = arith.constant 0 : i32
    %c0_i32_0 = arith.constant 0 : i32
    return %arg1, %c0_i32 : i32, i32
  }
  func.func @transform_2(%arg0: i32, %arg1: i32) -> (i32, i32) {
    %c0_i32 = arith.constant 0 : i32
    %c0_i32_0 = arith.constant 0 : i32
    %c0_i32_1 = arith.constant 0 : i32
    return %c0_i32, %c0_i32_0 : i32, i32
  }
  func.func @transform_3(%arg0: i32, %arg1: i32) -> (i32, i32) {
    %c0_i32 = arith.constant 0 : i32
    %c0_i32_0 = arith.constant 0 : i32
    %c0_i32_1 = arith.constant 0 : i32
    return %c0_i32, %c0_i32_0 : i32, i32
  }
  func.func @transform_4(%arg0: i32, %arg1: i32) -> (i32, i32) {
    %c0_i32 = arith.constant 0 : i32
    %c0_i32_0 = arith.constant 0 : i32
    return %arg0, %c0_i32 : i32, i32
  }
}

module attributes {stable_mosaic.version = 11 : i64} {
  func.func @gcn_layer1_kernel(%arg0: i32, %arg1: i32, %arg2: memref<128x128xbf16, #tpu.memory_space<vmem>>, %arg3: memref<1x128xf32, #tpu.memory_space<vmem>>, %arg4: memref<1x128xf32, #tpu.memory_space<vmem>>, %arg5: memref<1x128xf32, #tpu.memory_space<vmem>>, %arg6: memref<128x128xbf16, #tpu.memory_space<vmem>>, %arg7: memref<128x1xf32, #tpu.memory_space<vmem>>) attributes {dimension_semantics = [#tpu.dimension_semantics<parallel>, #tpu.dimension_semantics<arbitrary>], iteration_bounds = array<i64: 2, 2>, scalar_prefetch = 0 : i64, scratch_operands = 1 : i64, tpu.core_type = #tpu.core_type<tc>, window_params = [{transform_indices = @transform_0, window_bounds = array<i64: 128, 128>}, {transform_indices = @transform_1, window_bounds = array<i64: 1, 128>}, {pipeline_mode = #tpu.pipeline_mode<synchronous>, transform_indices = @transform_2, window_bounds = array<i64: 1, 128>}, {pipeline_mode = #tpu.pipeline_mode<synchronous>, transform_indices = @transform_3, window_bounds = array<i64: 1, 128>}, {transform_indices = @transform_4, window_bounds = array<i64: 128, 128>}]} {
    %c0_i32 = arith.constant 0 : i32
    %0 = arith.cmpi eq, %arg1, %c0_i32 : i32
    %1 = arith.extui %0 : i1 to i32
    %c0_i32_0 = arith.constant 0 : i32
    %2 = arith.cmpi ne, %1, %c0_i32_0 : i32
    scf.if %2 {
      %cst_9 = arith.constant 0.000000e+00 : f32
      %16 = vector.broadcast %cst_9 : f32 to vector<128x1xf32>
      %c0_10 = arith.constant 0 : index
      %c0_11 = arith.constant 0 : index
      %17 = vector.load %arg7[%c0_10, %c0_11] : memref<128x1xf32, #tpu.memory_space<vmem>>, vector<128x1xf32>
      tpu.vector_store %arg7[%c0_10, %c0_11], %16 {strides = array<i32>} : memref<128x1xf32, #tpu.memory_space<vmem>>, vector<128x1xf32>,
    } else {
    }
    %c0 = arith.constant 0 : index
    %c0_1 = arith.constant 0 : index
    %3 = vector.load %arg2[%c0, %c0_1] : memref<128x128xbf16, #tpu.memory_space<vmem>>, vector<128x128xbf16>
    %4 = arith.extf %3 : vector<128x128xbf16> to vector<128x128xf32>
    %c0_2 = arith.constant 0 : index
    %c0_3 = arith.constant 0 : index
    %5 = vector.load %arg3[%c0_2, %c0_3] : memref<1x128xf32, #tpu.memory_space<vmem>>, vector<1x128xf32>
    %c0_4 = arith.constant 0 : index
    %c0_5 = arith.constant 0 : index
    %6 = vector.load %arg7[%c0_4, %c0_5] : memref<128x1xf32, #tpu.memory_space<vmem>>, vector<128x1xf32>
    %7 = vector.broadcast %5 : vector<1x128xf32> to vector<128x128xf32>
    %8 = arith.mulf %4, %7 : vector<128x128xf32>
    %cst = arith.constant dense<0.000000e+00> : vector<128xf32>
    %9 = vector.multi_reduction <add>, %8, %cst [1] : vector<128x128xf32> to vector<128xf32>
    %10 = vector.shape_cast %9 : vector<128xf32> to vector<128x1xf32>
    %11 = arith.addf %6, %10 : vector<128x1xf32>
    %c0_6 = arith.constant 0 : index
    %c0_7 = arith.constant 0 : index
    %12 = vector.load %arg7[%c0_6, %c0_7] : memref<128x1xf32, #tpu.memory_space<vmem>>, vector<128x1xf32>
    tpu.vector_store %arg7[%c0_6, %c0_7], %11 {strides = array<i32>} : memref<128x1xf32, #tpu.memory_space<vmem>>, vector<128x1xf32>,
    %c1_i32 = arith.constant 1 : i32
    %13 = arith.cmpi eq, %arg1, %c1_i32 : i32
    %14 = arith.extui %13 : i1 to i32
    %c0_i32_8 = arith.constant 0 : i32
    %15 = arith.cmpi ne, %14, %c0_i32_8 : i32
    scf.if %15 {
      %c0_9 = arith.constant 0 : index
      %c0_10 = arith.constant 0 : index
      %16 = vector.load %arg7[%c0_9, %c0_10] : memref<128x1xf32, #tpu.memory_space<vmem>>, vector<128x1xf32>
      %c0_11 = arith.constant 0 : index
      %c0_12 = arith.constant 0 : index
      %17 = vector.load %arg4[%c0_11, %c0_12] : memref<1x128xf32, #tpu.memory_space<vmem>>, vector<1x128xf32>
      %18 = vector.broadcast %16 : vector<128x1xf32> to vector<128x128xf32>
      %19 = vector.broadcast %17 : vector<1x128xf32> to vector<128x128xf32>
      %20 = arith.mulf %18, %19 : vector<128x128xf32>
      %c0_13 = arith.constant 0 : index
      %c0_14 = arith.constant 0 : index
      %21 = vector.load %arg5[%c0_13, %c0_14] : memref<1x128xf32, #tpu.memory_space<vmem>>, vector<1x128xf32>
      %22 = vector.broadcast %21 : vector<1x128xf32> to vector<128x128xf32>
      %23 = arith.addf %20, %22 : vector<128x128xf32>
      %cst_15 = arith.constant 0.000000e+00 : f32
      %24 = vector.broadcast %cst_15 : f32 to vector<128x128xf32>
      %25 = arith.maximumf %23, %24 : vector<128x128xf32>
      %26 = arith.truncf %25 : vector<128x128xf32> to vector<128x128xbf16>
      %c0_16 = arith.constant 0 : index
      %c0_17 = arith.constant 0 : index
      %27 = vector.load %arg6[%c0_16, %c0_17] : memref<128x128xbf16, #tpu.memory_space<vmem>>, vector<128x128xbf16>
      tpu.vector_store %arg6[%c0_16, %c0_17], %26 {strides = array<i32>} : memref<128x128xbf16, #tpu.memory_space<vmem>>, vector<128x128xbf16>,
    } else {
    }
    return
  }
  func.func @transform_0(%arg0: i32, %arg1: i32) -> (i32, i32) {
    %c0_i32 = arith.constant 0 : i32
    return %arg0, %arg1 : i32, i32
  }
  func.func @transform_1(%arg0: i32, %arg1: i32) -> (i32, i32) {
    %c0_i32 = arith.constant 0 : i32
    %c0_i32_0 = arith.constant 0 : i32
    return %c0_i32, %arg1 : i32, i32
  }
  func.func @transform_2(%arg0: i32, %arg1: i32) -> (i32, i32) {
    %c0_i32 = arith.constant 0 : i32
    %c0_i32_0 = arith.constant 0 : i32
    %c0_i32_1 = arith.constant 0 : i32
    return %c0_i32, %c0_i32_0 : i32, i32
  }
  func.func @transform_3(%arg0: i32, %arg1: i32) -> (i32, i32) {
    %c0_i32 = arith.constant 0 : i32
    %c0_i32_0 = arith.constant 0 : i32
    %c0_i32_1 = arith.constant 0 : i32
    return %c0_i32, %c0_i32_0 : i32, i32
  }
  func.func @transform_4(%arg0: i32, %arg1: i32) -> (i32, i32) {
    %c0_i32 = arith.constant 0 : i32
    %c0_i32_0 = arith.constant 0 : i32
    return %arg0, %c0_i32 : i32, i32
  }
}

module attributes {stable_mosaic.version = 11 : i64} {
  func.func @readout_classify_kernel(%arg0: i32, %arg1: memref<8x128xf32, #tpu.memory_space<vmem>>, %arg2: memref<128x128xf32, #tpu.memory_space<vmem>>, %arg3: memref<128x128xf32, #tpu.memory_space<vmem>>, %arg4: memref<1x128xf32, #tpu.memory_space<vmem>>, %arg5: memref<8x128xf32, #tpu.memory_space<vmem>>, %arg6: memref<8x128xf32, #tpu.memory_space<vmem>>) attributes {dimension_semantics = [#tpu.dimension_semantics<arbitrary>], iteration_bounds = array<i64: 2>, scalar_prefetch = 0 : i64, scratch_operands = 1 : i64, tpu.core_type = #tpu.core_type<tc>, window_params = [{transform_indices = @transform_0, window_bounds = array<i64: 8, 128>}, {transform_indices = @transform_1, window_bounds = array<i64: 128, 128>}, {pipeline_mode = #tpu.pipeline_mode<synchronous>, transform_indices = @transform_2, window_bounds = array<i64: 128, 128>}, {pipeline_mode = #tpu.pipeline_mode<synchronous>, transform_indices = @transform_3, window_bounds = array<i64: 1, 128>}, {pipeline_mode = #tpu.pipeline_mode<synchronous>, transform_indices = @transform_4, window_bounds = array<i64: 8, 128>}]} {
    %c0_i32 = arith.constant 0 : i32
    %0 = arith.cmpi eq, %arg0, %c0_i32 : i32
    %1 = arith.extui %0 : i1 to i32
    %c0_i32_0 = arith.constant 0 : i32
    %2 = arith.cmpi ne, %1, %c0_i32_0 : i32
    scf.if %2 {
      %cst_9 = arith.constant 0.000000e+00 : f32
      %12 = vector.broadcast %cst_9 : f32 to vector<8x128xf32>
      %c0_10 = arith.constant 0 : index
      %c0_11 = arith.constant 0 : index
      %13 = vector.load %arg6[%c0_10, %c0_11] : memref<8x128xf32, #tpu.memory_space<vmem>>, vector<8x128xf32>
      tpu.vector_store %arg6[%c0_10, %c0_11], %12 {strides = array<i32>} : memref<8x128xf32, #tpu.memory_space<vmem>>, vector<8x128xf32>,
    } else {
    }
    %c0 = arith.constant 0 : index
    %c0_1 = arith.constant 0 : index
    %3 = vector.load %arg6[%c0, %c0_1] : memref<8x128xf32, #tpu.memory_space<vmem>>, vector<8x128xf32>
    %c0_2 = arith.constant 0 : index
    %c0_3 = arith.constant 0 : index
    %4 = vector.load %arg1[%c0_2, %c0_3] : memref<8x128xf32, #tpu.memory_space<vmem>>, vector<8x128xf32>
    %c0_4 = arith.constant 0 : index
    %c0_5 = arith.constant 0 : index
    %5 = vector.load %arg2[%c0_4, %c0_5] : memref<128x128xf32, #tpu.memory_space<vmem>>, vector<128x128xf32>
    %cst = arith.constant dense<0.000000e+00> : vector<8x128xf32>
    %6 = tpu.matmul %4, %5, %cst {dimension_numbers = #tpu.dot_dimension_numbers<[1], [0], [0], [1], [0, 0, 1, 1], [], []>} : vector<8x128xf32>, vector<128x128xf32>, vector<8x128xf32> -> vector<8x128xf32>
    %7 = arith.addf %3, %6 : vector<8x128xf32>
    %c0_6 = arith.constant 0 : index
    %c0_7 = arith.constant 0 : index
    %8 = vector.load %arg6[%c0_6, %c0_7] : memref<8x128xf32, #tpu.memory_space<vmem>>, vector<8x128xf32>
    tpu.vector_store %arg6[%c0_6, %c0_7], %7 {strides = array<i32>} : memref<8x128xf32, #tpu.memory_space<vmem>>, vector<8x128xf32>,
    %c1_i32 = arith.constant 1 : i32
    %9 = arith.cmpi eq, %arg0, %c1_i32 : i32
    %10 = arith.extui %9 : i1 to i32
    %c0_i32_8 = arith.constant 0 : i32
    %11 = arith.cmpi ne, %10, %c0_i32_8 : i32
    scf.if %11 {
      %c0_9 = arith.constant 0 : index
      %c0_10 = arith.constant 0 : index
      %12 = vector.load %arg6[%c0_9, %c0_10] : memref<8x128xf32, #tpu.memory_space<vmem>>, vector<8x128xf32>
      %c0_11 = arith.constant 0 : index
      %c0_12 = arith.constant 0 : index
      %13 = vector.load %arg3[%c0_11, %c0_12] : memref<128x128xf32, #tpu.memory_space<vmem>>, vector<128x128xf32>
      %cst_13 = arith.constant dense<0.000000e+00> : vector<8x128xf32>
      %14 = tpu.matmul %12, %13, %cst_13 {dimension_numbers = #tpu.dot_dimension_numbers<[1], [0], [0], [1], [0, 0, 1, 1], [], []>} : vector<8x128xf32>, vector<128x128xf32>, vector<8x128xf32> -> vector<8x128xf32>
      %c0_14 = arith.constant 0 : index
      %c0_15 = arith.constant 0 : index
      %15 = vector.load %arg4[%c0_14, %c0_15] : memref<1x128xf32, #tpu.memory_space<vmem>>, vector<1x128xf32>
      %16 = vector.broadcast %15 : vector<1x128xf32> to vector<8x128xf32>
      %17 = arith.addf %14, %16 : vector<8x128xf32>
      %c0_16 = arith.constant 0 : index
      %c0_17 = arith.constant 0 : index
      %18 = vector.load %arg5[%c0_16, %c0_17] : memref<8x128xf32, #tpu.memory_space<vmem>>, vector<8x128xf32>
      tpu.vector_store %arg5[%c0_16, %c0_17], %17 {strides = array<i32>} : memref<8x128xf32, #tpu.memory_space<vmem>>, vector<8x128xf32>,
    } else {
    }
    return
  }
  func.func @transform_0(%arg0: i32) -> (i32, i32) {
    %c0_i32 = arith.constant 0 : i32
    %c0_i32_0 = arith.constant 0 : i32
    return %c0_i32, %arg0 : i32, i32
  }
  func.func @transform_1(%arg0: i32) -> (i32, i32) {
    %c0_i32 = arith.constant 0 : i32
    %c0_i32_0 = arith.constant 0 : i32
    return %arg0, %c0_i32 : i32, i32
  }
  func.func @transform_2(%arg0: i32) -> (i32, i32) {
    %c0_i32 = arith.constant 0 : i32
    %c0_i32_0 = arith.constant 0 : i32
    %c0_i32_1 = arith.constant 0 : i32
    return %c0_i32, %c0_i32_0 : i32, i32
  }
  func.func @transform_3(%arg0: i32) -> (i32, i32) {
    %c0_i32 = arith.constant 0 : i32
    %c0_i32_0 = arith.constant 0 : i32
    %c0_i32_1 = arith.constant 0 : i32
    return %c0_i32, %c0_i32_0 : i32, i32
  }
  func.func @transform_4(%arg0: i32) -> (i32, i32) {
    %c0_i32 = arith.constant 0 : i32
    %c0_i32_0 = arith.constant 0 : i32
    %c0_i32_1 = arith.constant 0 : i32
    return %c0_i32, %c0_i32_0 : i32, i32
  }
}

</mosaic_0001>

<bundles_post_ra>
// kernel: classifier_forward.5
= control target key start
LH: loop header
LB: loop body
LE: loop exit
PB: predicated region body
PF: predicated region fallthrough
CT: control target
= control target key end

     0   :  { %s655_s15 = smov 0   ;;  %s754_s0 = inlined_call_operand.vmem [shape: f32[8,256], index: 0, kind: input, shape index: {}]   ;;  %s755_s1 = inlined_call_operand.vmem [shape: f32[256,128], index: 1, kind: input, shape index: {}]   ;;  %s756_s2 = inlined_call_operand.vmem [shape: f32[128,128], index: 2, kind: input, shape index: {}]   ;;  %s757_s3 = inlined_call_operand.vmem [shape: f32[1,128], index: 3, kind: input, shape index: {}]   ;;  %s758_s4 = inlined_call_operand.vmem [shape: f32[8,128], index: 4, kind: output, shape index: {}]  }
   0x1 LB: > { %s661_s16 = sadd.s32 4294967295, %s621_s15   ;;  %p439_p0 = scmp.ge.s32.totalorder %s621_s15, 1  ;;  %s621_s15 = sphi %s655_s15, %s14_s15  }
   0x2   : > { %p167_p1 = scmp.lt.s32.totalorder %s621_s15, 3 }
   0x4   : > { %p168_p2 = pnand %p439_p0, %p167_p1 }
   0x5   : > { %p192_p3 = scmp.lt.s32.totalorder (!%p168_p2), %s661_s16, 1  ;;  %s441_s17 = sshll.u32 (!%p168_p2), %s661_s16, 4 }
   0x6   : > { %171 = sbr.rel (%p168_p2) target bundleno = 492 (0x1ec), region = 36  ;;  %p197_p4 = scmp.lt.s32.totalorder (!%p168_p2), %s441_s17, 31 }
   0x7   : > { %p443_p5 = scmp.ne.s32.totalorder (!%p168_p2), %s661_s16, 0 }
   0xd   : > { %s193_s18 = scalar_select %p192_p3, %s661_s16, 1 }
   0xe   : > { %s760_s17 = smov (!%p197_p4, %s441_s17), 31  ;;  %205 = sbr.rel (%p443_p5) target bundleno = 21 (0x15), region = 40 }
   0xf   : > { %s440_s19 = sshll.u32 %s193_s18, 3  ;;  %s442_s23 = sshll.u32 %s760_s17, 3  ;;  %v623_v0 = vmov (!%p443_p5), 0.0  }
  0x10   : > { %s671_s22 = scalar_lea.vmem %s754_s0, %s440_s19  ;;  %s676_s26 = scalar_lea.vmem %s755_s1, %s442_s23  ;;  %206 = vst [vmem:[#allocation2] sm:$0xff] (!%p443_p5), %v623_v0 }
  0x15 PF: > { %v209_v1 = vld [vmem:[%s676_s26] sm:$0xff]  ;;  %v210_v2 = vld [vmem:[%s676_s26 + $0x8] sm:$0xff]  ;;  %v211_v3 = vld [vmem:[%s676_s26 + $0x10] sm:$0xff]  ;;  %v624_v4 = vmov 0.0|0.0   ;;  %vm625_vm0 = vmmov 0   ;;  %v626_v7 = vmov 0.0  }
  0x16   : > { %552 = vmatprep.subr.bf16.mxu0 %v624_v4  ;;  %v553_v5 = vpack.c.bf16 %v210_v2, %v209_v1  ;;  %v212_v6 = vld [vmem:[%s676_s26 + $0x18] sm:$0xff]  ;;  %514 = vmatprep.mubr.msk.f32.mxu0 %vm625_vm0, %v626_v7  ;;  %v213_v9 = vld [vmem:[%s676_s26 + $0x20] sm:$0xff]  ;;  %v214_v10 = vld [vmem:[%s676_s26 + $0x28] sm:$0xff]  ;;  %p444_p6 = scmp.ne.s32.totalorder %s661_s16, 1 }
  0x17   : > { %v556_v8 = vpack.c.bf16 %v212_v6, %v211_v3  ;;  %v559_v11 = vpack.c.bf16 %v214_v10, %v213_v9  ;;  %v215_v12 = vld [vmem:[%s676_s26 + $0x30] sm:$0xff]  ;;  %v216_v13 = vld [vmem:[%s676_s26 + $0x38] sm:$0xff]  ;;  %v217_v15 = vld [vmem:[%s676_s26 + $0x40] sm:$0xff]  ;;  %v627_v35 = vmov (!%p444_p6), 0.0|0.0   ;;  %vm628_vm1 = vmmov (!%p444_p6), 0  }
  0x18   : > { %554 = vmatpush3.bf16.msra.mxu0 %v553_v5  ;;  %v562_v14 = vpack.c.bf16 %v216_v13, %v215_v12  ;;  %v218_v16 = vld [vmem:[%s676_s26 + $0x48] sm:$0xff]  ;;  %v219_v18 = vld [vmem:[%s676_s26 + $0x50] sm:$0xff]  ;;  %v220_v19 = vld [vmem:[%s676_s26 + $0x58] sm:$0xff]  ;;  %v629_v38 = vmov (!%p444_p6), 0.0  }
  0x19   : > { %555 = vmatprep.subr.bf16.mxu0 %v624_v4  ;;  %v565_v17 = vpack.c.bf16 %v218_v16, %v217_v15  ;;  %v568_v20 = vpack.c.bf16 %v220_v19, %v219_v18  ;;  %v221_v21 = vld [vmem:[%s676_s26 + $0x60] sm:$0xff]  ;;  %v222_v22 = vld [vmem:[%s676_s26 + $0x68] sm:$0xff]  ;;  %v223_v24 = vld [vmem:[%s676_s26 + $0x70] sm:$0xff] }
  0x1a   : > { %v571_v23 = vpack.c.bf16 %v222_v22, %v221_v21  ;;  %v224_v25 = vld [vmem:[%s676_s26 + $0x78] sm:$0xff]  ;;  %v208_v27 = vld [vmem:[%s671_s22] sm:$0xff]  ;;  %v303_v33 = vld [vmem:[%s756_s2 + $0x8] sm:$0xff] (!%p444_p6) }
  0x1b   : > { %v574_v26 = vpack.c.bf16 %v224_v25, %v223_v24  ;;  %v207_v28 = vld [vmem:[#allocation2] sm:$0xff]  ;;  %v304_v34 = vld [vmem:[%s756_s2 + $0x10] sm:$0xff] (!%p444_p6)  ;;  %v305_v37 = vld [vmem:[%s756_s2 + $0x18] sm:$0xff] (!%p444_p6) }
  0x1c   : > { %557 = vmatpush3.bf16.msra.mxu0 %v556_v8  ;;  %v302_v32 = vld [vmem:[%s756_s2] sm:$0xff] (!%p444_p6)  ;;  %v580_v39 = vpack.c.bf16 (!%p444_p6), %v305_v37, %v304_v34  ;;  %v307_v41 = vld [vmem:[%s756_s2 + $0x28] sm:$0xff] (!%p444_p6)  ;;  %v308_v43 = vld [vmem:[%s756_s2 + $0x30] sm:$0xff] (!%p444_p6) }
  0x1d   : > { %558 = vmatprep.subr.bf16.mxu0 %v624_v4  ;;  %v577_v36 = vpack.c.bf16 (!%p444_p6), %v303_v33, %v302_v32  ;;  %v306_v40 = vld [vmem:[%s756_s2 + $0x20] sm:$0xff] (!%p444_p6)  ;;  %v309_v44 = vld [vmem:[%s756_s2 + $0x38] sm:$0xff] (!%p444_p6)  ;;  %v311_v47 = vld [vmem:[%s756_s2 + $0x48] sm:$0xff] (!%p444_p6) }
  0x1e   : > { %v583_v42 = vpack.c.bf16 (!%p444_p6), %v307_v41, %v306_v40  ;;  %v586_v45 = vpack.c.bf16 (!%p444_p6), %v309_v44, %v308_v43  ;;  %v310_v46 = vld [vmem:[%s756_s2 + $0x40] sm:$0xff] (!%p444_p6)  ;;  %v312_v49 = vld [vmem:[%s756_s2 + $0x50] sm:$0xff] (!%p444_p6)  ;;  %v313_v50 = vld [vmem:[%s756_s2 + $0x58] sm:$0xff] (!%p444_p6) }
  0x1f   : > { %v589_v48 = vpack.c.bf16 (!%p444_p6), %v311_v47, %v310_v46  ;;  %v592_v51 = vpack.c.bf16 (!%p444_p6), %v313_v50, %v312_v49  ;;  %v314_v52 = vld [vmem:[%s756_s2 + $0x60] sm:$0xff] (!%p444_p6)  ;;  %v315_v53 = vld [vmem:[%s756_s2 + $0x68] sm:$0xff] (!%p444_p6)  ;;  %v316_v55 = vld [vmem:[%s756_s2 + $0x70] sm:$0xff] (!%p444_p6) }
  0x20   : > { %560 = vmatpush3.bf16.msra.mxu0 %v559_v11  ;;  %v595_v54 = vpack.c.bf16 (!%p444_p6), %v315_v53, %v314_v52  ;;  %v317_v56 = vld [vmem:[%s756_s2 + $0x78] sm:$0xff] (!%p444_p6)  ;;  %v445_v59 = vld [vmem:[%s757_s3] ss:$0 sm:$0xff] (!%p444_p6) }
  0x21   : > { %561 = vmatprep.subr.bf16.mxu0 %v624_v4  ;;  %v598_v57 = vpack.c.bf16 (!%p444_p6), %v317_v56, %v316_v55 }
  0x24   : > { %563 = vmatpush3.bf16.msra.mxu0 %v562_v14 }
  0x25   : > { %564 = vmatprep.subr.bf16.mxu0 %v624_v4 }
  0x28   : > { %566 = vmatpush3.bf16.msra.mxu0 %v565_v17 }
  0x29   : > { %567 = vmatprep.subr.bf16.mxu0 %v624_v4 }
  0x2c   : > { %569 = vmatpush3.bf16.msra.mxu0 %v568_v20 }
  0x2d   : > { %570 = vmatprep.subr.bf16.mxu0 %v624_v4 }
  0x30   : > { %572 = vmatpush3.bf16.msra.mxu0 %v571_v23 }
  0x31   : > { %573 = vmatprep.subr.bf16.mxu0 %v624_v4 }
  0x34   : > { %575 = vmatpush3.bf16.msra.mxu0 %v574_v26 }
  0x35   : > { %576 = vmatprep.subr.bf16.mxu0 (!%p444_p6), %v627_v35 }
  0x37   : > { %515 = vmatmul.mubr.f32.vlgmr.msra.gmra.mrb[0].mxu0 %v208_v27 }
  0x38   : > { %549 = vmatprep.mubr.msk.f32.mxu0 (!%p444_p6), %vm628_vm1, %v629_v38  ;;  %578 = vmatpush3.bf16.msra.mxu0 (!%p444_p6), %v577_v36 }
  0x39   : > { %579 = vmatprep.subr.bf16.mxu0 (!%p444_p6), %v627_v35 }
  0x3c   : > { %581 = vmatpush3.bf16.msra.mxu0 (!%p444_p6), %v580_v39 }
  0x3d   : > { %582 = vmatprep.subr.bf16.mxu0 (!%p444_p6), %v627_v35 }
  0x40   : > { %584 = vmatpush3.bf16.msra.mxu0 (!%p444_p6), %v583_v42 }
  0x41   : > { %585 = vmatprep.subr.bf16.mxu0 (!%p444_p6), %v627_v35 }
  0x44   : > { %587 = vmatpush3.bf16.msra.mxu0 (!%p444_p6), %v586_v45 }
  0x45   : > { %588 = vmatprep.subr.bf16.mxu0 (!%p444_p6), %v627_v35 }
  0x48   : > { %590 = vmatpush3.bf16.msra.mxu0 (!%p444_p6), %v589_v48 }
  0x49   : > { %591 = vmatprep.subr.bf16.mxu0 (!%p444_p6), %v627_v35 }
  0x4c   : > { %593 = vmatpush3.bf16.msra.mxu0 (!%p444_p6), %v592_v51 }
  0x4d   : > { %594 = vmatprep.subr.bf16.mxu0 (!%p444_p6), %v627_v35 }
  0x50   : > { %596 = vmatpush3.bf16.msra.mxu0 (!%p444_p6), %v595_v54 }
  0x51   : > { %597 = vmatprep.subr.bf16.mxu0 (!%p444_p6), %v627_v35 }
  0x54   : > { %599 = vmatpush3.bf16.msra.mxu0 (!%p444_p6), %v598_v57 }
 0x107   : > { %300 = sbr.rel (%p444_p6) target bundleno = 492 (0x1ec), region = 44 }
 0x10a   : > { %v291_v29 = vpop.f32.mrb[0].mxu0 }
 0x10b   : > { %v295_v30 = vadd.f32 %v291_v29, %v207_v28  ;;  %v516_v31 = vpop.f32.mrb[1].mxu0 }
 0x10d   : > { %296 = vst [vmem:[#allocation2] sm:$0xff] %v295_v30 }
 0x114   : > { %v301_v58 = vld [vmem:[#allocation2] sm:$0xff] }
 0x115   : > { %550 = vmatmul.mubr.f32.vlgmr.msra.gmra.mrb[0].mxu0 %v301_v58 }
 0x1e8   : > { %v391_v60 = vpop.f32.mrb[0].mxu0 }
 0x1e9   : > { %v392_v61 = vadd.f32 %v445_v59, %v391_v60  ;;  %v551_v62 = vpop.f32.mrb[1].mxu0 }
 0x1eb   : > { %395 = vst [vmem:[%s758_s4] sm:$0xff] %v392_v61 }
 0x1ec PF: > { %s14_s15 = sadd.s32 1, %s621_s15  }
 0x1ed   : > { %p11_p7 = scmp.ge.s32.totalorder %s14_s15, 4  }
 0x1ef   :  { %13 = sbr.rel (!%p11_p7) target bundleno = 1 (0x1), region = 73 }

// kernel: classifier_forward.4
= control target key start
LH: loop header
LB: loop body
LE: loop exit
PB: predicated region body
PF: predicated region fallthrough
CT: control target
= control target key end

     0   :  { %s1333_s15 = smov 0   ;;  %s1335_s16 = smov 0   ;;  %s1534_s0 = inlined_call_operand.vmem [shape: bf16[256,256], index: 0, kind: input, shape index: {}]   ;;  %s1535_s1 = inlined_call_operand.vmem [shape: bf16[256,128], index: 1, kind: input, shape index: {}]   ;;  %s1536_s2 = inlined_call_operand.vmem [shape: f32[128,128], index: 2, kind: input, shape index: {}]   ;;  %s1537_s3 = inlined_call_operand.vmem [shape: f32[1,128], index: 3, kind: input, shape index: {}]   ;;  %s1538_s4 = inlined_call_operand.vmem [shape: f32[256,128], index: 4, kind: output, shape index: {}]  }
   0x1   :  { %s1337_s17 = smov 0   ;;  %s1339_s18 = smov 0  }
   0x2   :  { %s1341_s19 = smov 0   ;;  %s1343_s20 = smov 0  }
   0x3   :  { %s1345_s21 = smov 0  }
   0x4 LB: > { %s23_s22 = sadd.s32 1, %s1297_s19  ;;  %s26_s23 = sadd.s32 1, %s1301_s20  ;;  %s1305_s21 = sphi %s1345_s21, %s14_s21   ;;  %s1301_s20 = sphi %s1343_s20, %s1544_s20   ;;  %s1297_s19 = sphi %s1341_s19, %s1543_s19   ;;  %s1293_s18 = sphi %s1339_s18, %s1542_s18   ;;  %s1289_s17 = sphi %s1337_s17, %s1541_s17   ;;  %s1285_s16 = sphi %s1335_s16, %s1540_s16   ;;  %s1281_s15 = sphi %s1333_s15, %s1539_s15  }
   0x5   : > { %p24_p0 = scmp.ge.s32.totalorder %s23_s22, 2  ;;  %p42_p1 = scmp.ne.s32.totalorder %s1285_s16, %s1281_s15 }
   0x6   : > { %p43_p2 = scmp.eq.s32.totalorder %s1305_s21, 0  ;;  %s35_s27 = sadd.s32 1, %s1285_s16 }
   0x7   : > { %s1546_s22 = smov (%p24_p0, %s23_s22), 0  ;;  %s1548_s23 = smov (!%p24_p0, %s26_s23), %s1301_s20 }
   0x8   : > { %p44_p3 = por %p43_p2, %p42_p1  ;;  %p28_p4 = scmp.ge.s32.totalorder %s1548_s23, 2 }
   0x9   : > { %s31_s24 = ssub.s32 %s1297_s19, %s1546_s22  ;;  %p945_p6 = scmp.ge.s32.totalorder %s1305_s21, 4 }
   0xa   : > { %s1550_s23 = smov (%p28_p4, %s1548_s23), 0 }
   0xb   : > { %s30_s25 = ssub.s32 %s1301_s20, %s1550_s23  ;;  %168 = sbr.rel (%p945_p6) target bundleno = 34 (0x22), region = 24 }
   0xc   : > { %s32_s26 = sor.u32 %s31_s24, %s30_s25 }
   0xd   : > { %p33_p5 = scmp.eq.s32.totalorder %s32_s26, 0 }
   0xf   : > { %s1384_s28 = scalar_select %p33_p5, %s1285_s16, %s35_s27  }
  0x12   : > { %171 = sbr.rel (!%p44_p3) target bundleno = 34 (0x22), region = 28  ;;  %s173_s29 = sand.u32 (%p44_p3), 1, %s1285_s16  }
  0x13   : > { %s977_s30 = sshll.u32 (%p44_p3), %s1301_s20, 5  ;;  %s946_s5 = sshll.u32 (%p44_p3), %s173_s29, 6 }
  0x14   : > { %s178_s6 = sadd.s32 (%p44_p3), %s1297_s19, %s977_s30  ;;  %s175_s11 = scalar_lea.vmem (%p44_p3), [#allocation3], %s946_s5 }
  0x15   : > { %s949_s7 = sshll.u32 (%p44_p3), %s178_s6, 2 }
  0x16   : > { %s1393_s10 = scalar_lea.vmem (%p44_p3), %s1534_s0, %s949_s7 }
  0x17   : > { %v196_v0 = vld [vmem:[%s1393_s10] sm:$0xf] (%p44_p3)  ;;  %v198_v1 = vld [vmem:[%s1393_s10 + $0x8] sm:$0xf] (%p44_p3)  ;;  %v200_v2 = vld [vmem:[%s1393_s10 + $0x10] sm:$0xf] (%p44_p3) }
  0x18   : > { %197 = vst [vmem:[%s175_s11] sm:$0xf] (%p44_p3), %v196_v0  ;;  %199 = vst [vmem:[%s175_s11 + $0x4] sm:$0xf] (%p44_p3), %v198_v1  ;;  %v202_v3 = vld [vmem:[%s1393_s10 + $0x18] sm:$0xf] (%p44_p3) }
  0x19   : > { %201 = vst [vmem:[%s175_s11 + $0x8] sm:$0xf] %v200_v2  ;;  %v204_v4 = vld [vmem:[%s1393_s10 + $0x20] sm:$0xf]  ;;  %v206_v5 = vld [vmem:[%s1393_s10 + $0x28] sm:$0xf] }
  0x1a   : > { %203 = vst [vmem:[%s175_s11 + $0xc] sm:$0xf] %v202_v3  ;;  %205 = vst [vmem:[%s175_s11 + $0x10] sm:$0xf] %v204_v4  ;;  %v208_v6 = vld [vmem:[%s1393_s10 + $0x30] sm:$0xf] }
  0x1b   : > { %207 = vst [vmem:[%s175_s11 + $0x14] sm:$0xf] %v206_v5  ;;  %v210_v7 = vld [vmem:[%s1393_s10 + $0x38] sm:$0xf]  ;;  %v212_v8 = vld [vmem:[%s1393_s10 + $0x40] sm:$0xf] }
  0x1c   : > { %209 = vst [vmem:[%s175_s11 + $0x18] sm:$0xf] %v208_v6  ;;  %211 = vst [vmem:[%s175_s11 + $0x1c] sm:$0xf] %v210_v7  ;;  %v214_v9 = vld [vmem:[%s1393_s10 + $0x48] sm:$0xf] }
  0x1d   : > { %213 = vst [vmem:[%s175_s11 + $0x20] sm:$0xf] %v212_v8  ;;  %v216_v10 = vld [vmem:[%s1393_s10 + $0x50] sm:$0xf]  ;;  %v218_v11 = vld [vmem:[%s1393_s10 + $0x58] sm:$0xf] }
  0x1e   : > { %215 = vst [vmem:[%s175_s11 + $0x24] sm:$0xf] %v214_v9  ;;  %217 = vst [vmem:[%s175_s11 + $0x28] sm:$0xf] %v216_v10  ;;  %v220_v12 = vld [vmem:[%s1393_s10 + $0x60] sm:$0xf] }
  0x1f   : > { %219 = vst [vmem:[%s175_s11 + $0x2c] sm:$0xf] %v218_v11  ;;  %v222_v13 = vld [vmem:[%s1393_s10 + $0x68] sm:$0xf]  ;;  %v224_v14 = vld [vmem:[%s1393_s10 + $0x70] sm:$0xf] }
  0x20   : > { %221 = vst [vmem:[%s175_s11 + $0x30] sm:$0xf] %v220_v12  ;;  %223 = vst [vmem:[%s175_s11 + $0x34] sm:$0xf] %v222_v13  ;;  %v226_v15 = vld [vmem:[%s1393_s10 + $0x78] sm:$0xf] }
  0x21   : > { %225 = vst [vmem:[%s175_s11 + $0x38] sm:$0xf] %v224_v14  ;;  %227 = vst [vmem:[%s175_s11 + $0x3c] sm:$0xf] %v226_v15 }
  0x22 PF: > { %p950_p7 = scmp.ge.s32.totalorder %s1305_s21, 1  ;;  %p290_p8 = scmp.lt.s32.totalorder %s1305_s21, 5 }
  0x24   : > { %p291_p9 = pnand %p950_p7, %p290_p8 }
  0x25   : > { %s297_s12 = sand.u32 (!%p291_p9), 1, %s1281_s15   ;;  %s952_s13 = sshll.u32 (!%p291_p9), %s1289_s17, 4 }
  0x26   : > { %294 = sbr.rel (%p291_p9) target bundleno = 549 (0x225), region = 73  ;;  %s951_s14 = sshll.u32 (!%p291_p9), %s297_s12, 6 }
  0x27   : > { %p329_p10 = scmp.lt.s32.totalorder (!%p291_p9), %s952_s13, 31  ;;  %s954_s24 = sshll.u32 (!%p291_p9), %s1293_s18, 4 }
  0x28   : > { %p335_p11 = scmp.lt.s32.totalorder (!%p291_p9), %s954_s24, 31  ;;  %s1426_s15 = scalar_lea.vmem (!%p291_p9), [#allocation3], %s951_s14 }
  0x29   : > { %p956_p12 = scmp.ne.s32.totalorder (!%p291_p9), %s1289_s17, 0 }
  0x2d   : > { %s1552_s13 = smov (!%p329_p10, %s952_s13), 31  ;;  %s1554_s24 = smov (!%p335_p11, %s954_s24), 31 }
  0x2e   : > { %s953_s25 = sshll.u32 %s1552_s13, 2  ;;  %s955_s30 = sshll.u32 %s1554_s24, 3  ;;  %v1307_v16 = vmov (!%p956_p12), 0.0  }
  0x2f   : > { %s1419_s29 = scalar_lea.vmem %s1535_s1, %s953_s25  ;;  %s1424_s7 = scalar_lea.vmem %s1538_s4, %s955_s30  ;;  %345 = vst [vmem:[#allocation2] sm:$0xff] (!%p956_p12), %v1307_v16  ;;  %346 = vst [vmem:[#allocation2 + $0x8] sm:$0xff] (!%p956_p12), %v1307_v16 }
  0x30   : > { %344 = sbr.rel (%p956_p12) target bundleno = 55 (0x37), region = 81  ;;  %347 = vst [vmem:[#allocation2 + $0x10] sm:$0xff] (!%p956_p12), %v1307_v16  ;;  %348 = vst [vmem:[#allocation2 + $0x18] sm:$0xff] (!%p956_p12), %v1307_v16 }
  0x31   : > { %349 = vst [vmem:[#allocation2 + $0x20] sm:$0xff] (!%p956_p12), %v1307_v16  ;;  %350 = vst [vmem:[#allocation2 + $0x28] sm:$0xff] (!%p956_p12), %v1307_v16 }
  0x32   : > { %351 = vst [vmem:[#allocation2 + $0x30] sm:$0xff] (!%p956_p12), %v1307_v16  ;;  %352 = vst [vmem:[#allocation2 + $0x38] sm:$0xff] (!%p956_p12), %v1307_v16 }
  0x33   : > { %353 = vst [vmem:[#allocation2 + $0x40] sm:$0xff] (!%p956_p12), %v1307_v16  ;;  %354 = vst [vmem:[#allocation2 + $0x48] sm:$0xff] (!%p956_p12), %v1307_v16 }
  0x34   : > { %355 = vst [vmem:[#allocation2 + $0x50] sm:$0xff] (!%p956_p12), %v1307_v16  ;;  %356 = vst [vmem:[#allocation2 + $0x58] sm:$0xff] (!%p956_p12), %v1307_v16 }
  0x35   : > { %357 = vst [vmem:[#allocation2 + $0x60] sm:$0xff] (!%p956_p12), %v1307_v16  ;;  %358 = vst [vmem:[#allocation2 + $0x68] sm:$0xff] (!%p956_p12), %v1307_v16 }
  0x36   : > { %359 = vst [vmem:[#allocation2 + $0x70] sm:$0xff] (!%p956_p12), %v1307_v16  ;;  %360 = vst [vmem:[#allocation2 + $0x78] sm:$0xff] (!%p956_p12), %v1307_v16 }
  0x37 PF: > { %v1235_v17 = vld [vmem:[%s1419_s29] sm:$0xff]   ;;  %v1236_v18 = vld [vmem:[%s1419_s29 + $0x8] sm:$0xff]   ;;  %v1237_v19 = vld [vmem:[%s1419_s29 + $0x10] sm:$0xff]   ;;  %p973_p13 = scmp.ne.s32.totalorder %s1289_s17, 1 }
  0x38   : > { %1026 = vmatprep.subr.bf16.mxu0 %v1235_v17  ;;  %1146 = vmatprep.subr.bf16.mxu1 %v1235_v17  ;;  %v1238_v20 = vld [vmem:[%s1419_s29 + $0x18] sm:$0xff]   ;;  %v1243_v21 = vld [vmem:[%s1426_s15] sm:$0xff]   ;;  %v1240_v24 = vld [vmem:[%s1419_s29 + $0x28] sm:$0xff]  }
  0x39   : > { %1027 = vmatpush3.bf16.msra.mxu0 %v1235_v17  ;;  %1154 = vmatpush3.bf16.msra.mxu1 %v1235_v17  ;;  %v1244_v22 = vld [vmem:[%s1426_s15 + $0x20] sm:$0xff]   ;;  %v1241_v25 = vld [vmem:[%s1419_s29 + $0x30] sm:$0xff]   ;;  %v1242_v26 = vld [vmem:[%s1419_s29 + $0x38] sm:$0xff]  }
  0x3a   : > { %1028 = vmatprep.subr.bf16.mxu0 %v1236_v18  ;;  %1147 = vmatprep.subr.bf16.mxu1 %v1236_v18  ;;  %v1239_v23 = vld [vmem:[%s1419_s29 + $0x20] sm:$0xff]   ;;  %v1245_v27 = vld [vmem:[%s1426_s15 + $0x8] sm:$0xff]   ;;  %v1247_v29 = vld [vmem:[%s1426_s15 + $0x10] sm:$0xff]  }
  0x3b   : > { %1042 = vmatprep.mubr.bf16.mxu0 %v1243_v21  ;;  %1050 = vmatprep.mubr.bf16.mxu1 %v1244_v22  ;;  %v1246_v28 = vld [vmem:[%s1426_s15 + $0x28] sm:$0xff]   ;;  %v1248_v30 = vld [vmem:[%s1426_s15 + $0x30] sm:$0xff]   ;;  %v1249_v31 = vld [vmem:[%s1426_s15 + $0x18] sm:$0xff]  }
  0x3c   : > { %v1250_v32 = vld [vmem:[%s1426_s15 + $0x38] sm:$0xff]   ;;  %v363_v33 = vld [vmem:[#allocation2 + $0x10] sm:$0xff]  ;;  %v361_v35 = vld [vmem:[#allocation2] sm:$0xff] }
  0x3d   : > { %1029 = vmatpush3.bf16.msra.mxu0 %v1236_v18  ;;  %1155 = vmatpush3.bf16.msra.mxu1 %v1236_v18  ;;  %v371_v34 = vld [vmem:[#allocation2 + $0x50] sm:$0xff]  ;;  %v369_v36 = vld [vmem:[#allocation2 + $0x40] sm:$0xff]  ;;  %v364_v39 = vld [vmem:[#allocation2 + $0x18] sm:$0xff] }
  0x3e   : > { %1030 = vmatprep.subr.bf16.mxu0 %v1237_v19  ;;  %1148 = vmatprep.subr.bf16.mxu1 %v1237_v19  ;;  %v372_v40 = vld [vmem:[#allocation2 + $0x58] sm:$0xff]  ;;  %v362_v45 = vld [vmem:[#allocation2 + $0x8] sm:$0xff]  ;;  %v367_v57 = vld [vmem:[#allocation2 + $0x30] sm:$0xff] }
  0x3f   : > { %v370_v46 = vld [vmem:[#allocation2 + $0x48] sm:$0xff]  ;;  %v375_v58 = vld [vmem:[#allocation2 + $0x70] sm:$0xff]  ;;  %v365_v59 = vld [vmem:[#allocation2 + $0x20] sm:$0xff] }
  0x40   : > { %v373_v60 = vld [vmem:[#allocation2 + $0x60] sm:$0xff]  ;;  %v368_v63 = vld [vmem:[#allocation2 + $0x38] sm:$0xff]  ;;  %v366_v5 = vld [vmem:[#allocation2 + $0x28] sm:$0xff] }
  0x41   : > { %1031 = vmatpush3.bf16.msra.mxu0 %v1237_v19  ;;  %1156 = vmatpush3.bf16.msra.mxu1 %v1237_v19  ;;  %v376_v0 = vld [vmem:[#allocation2 + $0x78] sm:$0xff]  ;;  %v374_v6 = vld [vmem:[#allocation2 + $0x68] sm:$0xff]  ;;  %v654_v17 = vld [vmem:[%s1536_s2] sm:$0xff] (!%p973_p13) }
  0x42   : > { %1032 = vmatprep.subr.bf16.mxu0 %v1238_v20  ;;  %1149 = vmatprep.subr.bf16.mxu1 %v1238_v20  ;;  %v655_v18 = vld [vmem:[%s1536_s2 + $0x8] sm:$0xff] (!%p973_p13)  ;;  %v656_v19 = vld [vmem:[%s1536_s2 + $0x10] sm:$0xff] (!%p973_p13)  ;;  %v657_v21 = vld [vmem:[%s1536_s2 + $0x18] sm:$0xff] (!%p973_p13) }
  0x43   : > { %v1118_v22 = vpack.c.bf16 (!%p973_p13), %v657_v21, %v656_v19 }
  0x45   : > { %1033 = vmatpush3.bf16.msra.mxu0 %v1238_v20  ;;  %1157 = vmatpush3.bf16.msra.mxu1 %v1238_v20  ;;  %v1114_v20 = vpack.c.bf16 (!%p973_p13), %v655_v18, %v654_v17 }
  0x46   : > { %1034 = vmatprep.subr.bf16.mxu0 %v1239_v23  ;;  %1150 = vmatprep.subr.bf16.mxu1 %v1239_v23 }
  0x49   : > { %1035 = vmatpush3.bf16.msra.mxu0 %v1239_v23  ;;  %1158 = vmatpush3.bf16.msra.mxu1 %v1239_v23  ;;  %v658_v23 = vld [vmem:[%s1536_s2 + $0x20] sm:$0xff] (!%p973_p13) }
  0x4a   : > { %1036 = vmatprep.subr.bf16.mxu0 %v1240_v24  ;;  %1151 = vmatprep.subr.bf16.mxu1 %v1240_v24 }
  0x4d   : > { %1037 = vmatpush3.bf16.msra.mxu0 %v1240_v24  ;;  %1159 = vmatpush3.bf16.msra.mxu1 %v1240_v24  ;;  %v659_v24 = vld [vmem:[%s1536_s2 + $0x28] sm:$0xff] (!%p973_p13) }
  0x4e   : > { %1038 = vmatprep.subr.bf16.mxu0 %v1241_v25  ;;  %1152 = vmatprep.subr.bf16.mxu1 %v1241_v25 }
  0x51   : > { %1039 = vmatpush3.bf16.msra.mxu0 %v1241_v25  ;;  %1160 = vmatpush3.bf16.msra.mxu1 %v1241_v25  ;;  %v1122_v25 = vpack.c.bf16 (!%p973_p13), %v659_v24, %v658_v23 }
  0x52   : > { %1040 = vmatprep.subr.bf16.mxu0 %v1242_v26  ;;  %1153 = vmatprep.subr.bf16.mxu1 %v1242_v26 }
  0x55   : > { %1041 = vmatpush3.bf16.msra.mxu0 %v1242_v26  ;;  %1161 = vmatpush3.bf16.msra.mxu1 %v1242_v26 }
  0x56   : > { %1115 = vmatprep.subr.bf16.mxu0 (!%p973_p13), %v1114_v20  ;;  %1162 = vmatprep.subr.bf16.mxu1 (!%p973_p13), %v1114_v20 }
  0x58   : > { %1043 = vmatmul.mubr.bf16.vlgmr.msra.gmra.mrb[0].mxu0 %v1245_v27  ;;  %1051 = vmatmul.mubr.bf16.vlgmr.msra.gmra.mrb[0].mxu1 %v1246_v28  ;;  %v660_v28 = vld [vmem:[%s1536_s2 + $0x30] sm:$0xff] (!%p973_p13) }
  0x59   : > { %1046 = vmatprep.mubr.bf16.mxu0 %v1247_v29  ;;  %1054 = vmatprep.mubr.bf16.mxu1 %v1248_v30  ;;  %v661_v29 = vld [vmem:[%s1536_s2 + $0x38] sm:$0xff] (!%p973_p13) }
  0x5a   : > { %1117 = vmatpush3.bf16.msra.mxu0 (!%p973_p13), %v1114_v20  ;;  %1170 = vmatpush3.bf16.msra.mxu1 (!%p973_p13), %v1114_v20  ;;  %v1126_v30 = vpack.c.bf16 (!%p973_p13), %v661_v29, %v660_v28 }
  0x5b   : > { %1119 = vmatprep.subr.bf16.mxu0 (!%p973_p13), %v1118_v22  ;;  %1163 = vmatprep.subr.bf16.mxu1 (!%p973_p13), %v1118_v22 }
  0x5e   : > { %1121 = vmatpush3.bf16.msra.mxu0 (!%p973_p13), %v1118_v22  ;;  %1171 = vmatpush3.bf16.msra.mxu1 (!%p973_p13), %v1118_v22 }
  0x5f   : > { %1123 = vmatprep.subr.bf16.mxu0 (!%p973_p13), %v1122_v25  ;;  %1164 = vmatprep.subr.bf16.mxu1 (!%p973_p13), %v1122_v25 }
  0x60   : > { %1047 = vmatmul.mubr.bf16.gmra.mrb[4].mxu0 %v1249_v31  ;;  %1055 = vmatmul.mubr.bf16.gmra.mrb[4].mxu1 %v1250_v32  ;;  %v662_v31 = vld [vmem:[%s1536_s2 + $0x40] sm:$0xff] (!%p973_p13)  ;;  %v663_v32 = vld [vmem:[%s1536_s2 + $0x48] sm:$0xff] (!%p973_p13) }
  0x62   : > { %1125 = vmatpush3.bf16.msra.mxu0 (!%p973_p13), %v1122_v25  ;;  %1172 = vmatpush3.bf16.msra.mxu1 (!%p973_p13), %v1122_v25 }
  0x63   : > { %1127 = vmatprep.subr.bf16.mxu0 (!%p973_p13), %v1126_v30  ;;  %1165 = vmatprep.subr.bf16.mxu1 (!%p973_p13), %v1126_v30 }
  0x66   : > { %1129 = vmatpush3.bf16.msra.mxu0 (!%p973_p13), %v1126_v30  ;;  %1173 = vmatpush3.bf16.msra.mxu1 (!%p973_p13), %v1126_v30 }
 0x12b   : > { %v1044_v37 = vpop.f32.mrb[0].mxu0  ;;  %v1052_v38 = vpop.f32.mrb[0].mxu1 }
 0x12c   : > { %v604_v41 = vadd.f32 %v1044_v37, %v363_v33  ;;  %v612_v42 = vadd.f32 %v1052_v38, %v371_v34  ;;  %v539_v43 = vpop.f32.mrb[1].mxu0  ;;  %v571_v44 = vpop.f32.mrb[1].mxu1  ;;  %v1130_v33 = vpack.c.bf16 (!%p973_p13), %v663_v32, %v662_v31  ;;  %v664_v34 = vld [vmem:[%s1536_s2 + $0x50] sm:$0xff] (!%p973_p13)  ;;  %v666_v37 = vld [vmem:[%s1536_s2 + $0x60] sm:$0xff] (!%p973_p13)  ;;  %v667_v38 = vld [vmem:[%s1536_s2 + $0x68] sm:$0xff] (!%p973_p13) }
 0x12d   : > { %v602_v47 = vadd.f32 %v539_v43, %v361_v35  ;;  %v610_v48 = vadd.f32 %v571_v44, %v369_v36  ;;  %v1045_v49 = vpop.f32.mrb[2].mxu0  ;;  %v1053_v50 = vpop.f32.mrb[2].mxu1  ;;  %v665_v35 = vld [vmem:[%s1536_s2 + $0x58] sm:$0xff] (!%p973_p13) }
 0x12e   : > { %620 = vst [vmem:[#allocation2 + $0x10] sm:$0xff] %v604_v41  ;;  %628 = vst [vmem:[#allocation2 + $0x50] sm:$0xff] %v612_v42  ;;  %v605_v51 = vadd.f32 %v1045_v49, %v364_v39  ;;  %v613_v52 = vadd.f32 %v1053_v50, %v372_v40  ;;  %v542_v53 = vpop.f32.mrb[3].mxu0  ;;  %v574_v54 = vpop.f32.mrb[3].mxu1  ;;  %1131 = vmatprep.subr.bf16.mxu0 (!%p973_p13), %v1130_v33  ;;  %1166 = vmatprep.subr.bf16.mxu1 (!%p973_p13), %v1130_v33  ;;  %v668_v40 = vld [vmem:[%s1536_s2 + $0x70] sm:$0xff] (!%p973_p13)  ;;  %v669_v41 = vld [vmem:[%s1536_s2 + $0x78] sm:$0xff] (!%p973_p13) }
 0x12f   : > { %618 = vst [vmem:[#allocation2] sm:$0xff] %v602_v47  ;;  %626 = vst [vmem:[#allocation2 + $0x40] sm:$0xff] %v610_v48  ;;  %v603_v55 = vadd.f32 %v542_v53, %v362_v45  ;;  %v611_v56 = vadd.f32 %v574_v54, %v370_v46  ;;  %v1134_v36 = vpack.c.bf16 (!%p973_p13), %v665_v35, %v664_v34  ;;  %1133 = vmatpush3.bf16.msra.mxu0 (!%p973_p13), %v1130_v33 }
 0x130   : > { %621 = vst [vmem:[#allocation2 + $0x18] sm:$0xff] %v605_v51  ;;  %629 = vst [vmem:[#allocation2 + $0x58] sm:$0xff] %v613_v52  ;;  %1174 = vmatpush3.bf16.msra.mxu1 (!%p973_p13), %v1130_v33  ;;  %v1138_v39 = vpack.c.bf16 (!%p973_p13), %v667_v38, %v666_v37  ;;  %v1142_v42 = vpack.c.bf16 (!%p973_p13), %v669_v41, %v668_v40 }
 0x131   : > { %619 = vst [vmem:[#allocation2 + $0x8] sm:$0xff] %v603_v55  ;;  %627 = vst [vmem:[#allocation2 + $0x48] sm:$0xff] %v611_v56  ;;  %1135 = vmatprep.subr.bf16.mxu0 (!%p973_p13), %v1134_v36  ;;  %1167 = vmatprep.subr.bf16.mxu1 (!%p973_p13), %v1134_v36 }
 0x133   : > { %v1048_v61 = vpop.f32.mrb[4].mxu0  ;;  %v1056_v62 = vpop.f32.mrb[4].mxu1  ;;  %637 = sbr.rel (%p973_p13) target bundleno = 549 (0x225), region = 85  ;;  %1137 = vmatpush3.bf16.msra.mxu0 (!%p973_p13), %v1134_v36 }
 0x134   : > { %v608_v1 = vadd.f32 %v1048_v61, %v367_v57  ;;  %v616_v2 = vadd.f32 %v1056_v62, %v375_v58  ;;  %v555_v3 = vpop.f32.mrb[5].mxu0  ;;  %v587_v4 = vpop.f32.mrb[5].mxu1  ;;  %1175 = vmatpush3.bf16.msra.mxu1 (!%p973_p13), %v1134_v36  ;;  %1139 = vmatprep.subr.bf16.mxu0 (!%p973_p13), %v1138_v39  ;;  %v974_v57 = vld [vmem:[%s1537_s3] ss:$0 sm:$0xff] (!%p973_p13) }
 0x135   : > { %v606_v7 = vadd.f32 %v555_v3, %v365_v59  ;;  %v614_v8 = vadd.f32 %v587_v4, %v373_v60  ;;  %v1049_v9 = vpop.f32.mrb[6].mxu0  ;;  %v1057_v10 = vpop.f32.mrb[6].mxu1  ;;  %1168 = vmatprep.subr.bf16.mxu1 (!%p973_p13), %v1138_v39  ;;  %v640_v45 = vld [vmem:[#allocation2 + $0x10] sm:$0xff] (!%p973_p13) }
 0x136   : > { %624 = vst [vmem:[#allocation2 + $0x30] sm:$0xff] %v608_v1  ;;  %632 = vst [vmem:[#allocation2 + $0x70] sm:$0xff] %v616_v2  ;;  %v609_v11 = vadd.f32 %v1049_v9, %v368_v63  ;;  %v617_v12 = vadd.f32 %v1057_v10, %v376_v0  ;;  %v558_v13 = vpop.f32.mrb[7].mxu0  ;;  %v590_v14 = vpop.f32.mrb[7].mxu1  ;;  %v638_v26 = vld [vmem:[#allocation2] sm:$0xff] (!%p973_p13)  ;;  %v648_v46 = vld [vmem:[#allocation2 + $0x50] sm:$0xff] (!%p973_p13) }
 0x137   : > { %622 = vst [vmem:[#allocation2 + $0x20] sm:$0xff] %v606_v7  ;;  %630 = vst [vmem:[#allocation2 + $0x60] sm:$0xff] %v614_v8  ;;  %v607_v15 = vadd.f32 %v558_v13, %v366_v5  ;;  %v615_v16 = vadd.f32 %v590_v14, %v374_v6  ;;  %v646_v27 = vld [vmem:[#allocation2 + $0x40] sm:$0xff] (!%p973_p13)  ;;  %1090 = vmatprep.mubr.f32.mxu0 (!%p973_p13), %v638_v26  ;;  %1141 = vmatpush3.bf16.msra.mxu0 (!%p973_p13), %v1138_v39  ;;  %v641_v47 = vld [vmem:[#allocation2 + $0x18] sm:$0xff] (!%p973_p13) }
 0x138   : > { %625 = vst [vmem:[#allocation2 + $0x38] sm:$0xff] %v609_v11  ;;  %633 = vst [vmem:[#allocation2 + $0x78] sm:$0xff] %v617_v12  ;;  %1102 = vmatprep.mubr.f32.mxu1 (!%p973_p13), %v646_v27  ;;  %1176 = vmatpush3.bf16.msra.mxu1 (!%p973_p13), %v1138_v39  ;;  %v639_v43 = vld [vmem:[#allocation2 + $0x8] sm:$0xff] (!%p973_p13)  ;;  %v649_v48 = vld [vmem:[#allocation2 + $0x58] sm:$0xff] (!%p973_p13) }
 0x139   : > { %623 = vst [vmem:[#allocation2 + $0x28] sm:$0xff] %v607_v15  ;;  %631 = vst [vmem:[#allocation2 + $0x68] sm:$0xff] %v615_v16  ;;  %1143 = vmatprep.subr.bf16.mxu0 (!%p973_p13), %v1142_v42  ;;  %1169 = vmatprep.subr.bf16.mxu1 (!%p973_p13), %v1142_v42  ;;  %v647_v44 = vld [vmem:[#allocation2 + $0x48] sm:$0xff] (!%p973_p13) }
 0x13b   : > { %1145 = vmatpush3.bf16.msra.mxu0 %v1142_v42 }
 0x13c   : > { %1177 = vmatpush3.bf16.msra.mxu1 %v1142_v42 }
 0x13d   : > { %v644_v53 = vld [vmem:[#allocation2 + $0x30] sm:$0xff] }
 0x13e   : > { %1091 = vmatmul.mubr.f32.vlgmr.msra.gmra.mrb[0].mxu0 %v639_v43  ;;  %v642_v49 = vld [vmem:[#allocation2 + $0x20] sm:$0xff]  ;;  %v652_v54 = vld [vmem:[#allocation2 + $0x70] sm:$0xff] }
 0x13f   : > { %1103 = vmatmul.mubr.f32.vlgmr.msra.gmra.mrb[0].mxu1 %v647_v44  ;;  %1093 = vmatprep.mubr.f32.mxu0 %v640_v45  ;;  %v650_v50 = vld [vmem:[#allocation2 + $0x60] sm:$0xff]  ;;  %v645_v55 = vld [vmem:[#allocation2 + $0x38] sm:$0xff] }
 0x140   : > { %1105 = vmatprep.mubr.f32.mxu1 %v648_v46  ;;  %v643_v51 = vld [vmem:[#allocation2 + $0x28] sm:$0xff]  ;;  %v653_v56 = vld [vmem:[#allocation2 + $0x78] sm:$0xff] }
 0x141   : > { %v651_v52 = vld [vmem:[#allocation2 + $0x68] sm:$0xff] }
 0x142   : > { %1094 = vmatmul.mubr.f32.gmra.mrb[2].mxu0 %v641_v47 }
 0x143   : > { %1106 = vmatmul.mubr.f32.gmra.mrb[2].mxu1 %v649_v48  ;;  %1096 = vmatprep.mubr.f32.mxu0 %v642_v49 }
 0x144   : > { %1108 = vmatprep.mubr.f32.mxu1 %v650_v50 }
 0x146   : > { %1097 = vmatmul.mubr.f32.gmra.mrb[4].mxu0 %v643_v51 }
 0x147   : > { %1109 = vmatmul.mubr.f32.gmra.mrb[4].mxu1 %v651_v52  ;;  %1099 = vmatprep.mubr.f32.mxu0 %v644_v53 }
 0x148   : > { %1111 = vmatprep.mubr.f32.mxu1 %v652_v54 }
 0x14a   : > { %1100 = vmatmul.mubr.f32.gmra.mrb[6].mxu0 %v645_v55 }
 0x14b   : > { %1112 = vmatmul.mubr.f32.gmra.mrb[6].mxu1 %v653_v56 }
 0x211   : > { %v1092_v58 = vpop.f32.mrb[0].mxu0 }
 0x212   : > { %v1104_v59 = vpop.f32.mrb[0].mxu1  ;;  %v749_v60 = vadd.f32 %v1092_v58, %v974_v57  ;;  %v743_v62 = vpop.f32.mrb[1].mxu0 }
 0x213   : > { %v789_v61 = vadd.f32 %v1104_v59, %v974_v57  ;;  %v783_v63 = vpop.f32.mrb[1].mxu1  ;;  %v744_v0 = vadd.f32 %v974_v57, %v743_v62 }
 0x214   : > { %v784_v1 = vadd.f32 %v974_v57, %v783_v63  ;;  %v823_v2 = vmax.f32 %v749_v60, 0.0 }
 0x215   : > { %v831_v3 = vmax.f32 %v789_v61, 0.0  ;;  %v822_v4 = vmax.f32 %v744_v0, 0.0  ;;  %v1095_v6 = vpop.f32.mrb[2].mxu0 }
 0x216   : > { %v830_v5 = vmax.f32 %v784_v1, 0.0  ;;  %v1107_v7 = vpop.f32.mrb[2].mxu1  ;;  %839 = vst [vmem:[%s1424_s7 + $0x8] sm:$0xff] %v823_v2  ;;  %v759_v8 = vadd.f32 %v1095_v6, %v974_v57  ;;  %v753_v10 = vpop.f32.mrb[3].mxu0 }
 0x217   : > { %847 = vst [vmem:[%s1424_s7 + $0x48] sm:$0xff] %v831_v3  ;;  %v799_v9 = vadd.f32 %v1107_v7, %v974_v57  ;;  %v793_v11 = vpop.f32.mrb[3].mxu1  ;;  %838 = vst [vmem:[%s1424_s7] sm:$0xff] %v822_v4  ;;  %v754_v12 = vadd.f32 %v974_v57, %v753_v10 }
 0x218   : > { %846 = vst [vmem:[%s1424_s7 + $0x40] sm:$0xff] %v830_v5  ;;  %v794_v13 = vadd.f32 %v974_v57, %v793_v11  ;;  %v825_v14 = vmax.f32 %v759_v8, 0.0 }
 0x219   : > { %v833_v15 = vmax.f32 %v799_v9, 0.0  ;;  %v824_v16 = vmax.f32 %v754_v12, 0.0  ;;  %v1098_v18 = vpop.f32.mrb[4].mxu0 }
 0x21a   : > { %v832_v17 = vmax.f32 %v794_v13, 0.0  ;;  %v1110_v19 = vpop.f32.mrb[4].mxu1  ;;  %841 = vst [vmem:[%s1424_s7 + $0x18] sm:$0xff] %v825_v14  ;;  %v769_v20 = vadd.f32 %v1098_v18, %v974_v57  ;;  %v763_v22 = vpop.f32.mrb[5].mxu0 }
 0x21b   : > { %849 = vst [vmem:[%s1424_s7 + $0x58] sm:$0xff] %v833_v15  ;;  %v809_v21 = vadd.f32 %v1110_v19, %v974_v57  ;;  %v803_v23 = vpop.f32.mrb[5].mxu1  ;;  %840 = vst [vmem:[%s1424_s7 + $0x10] sm:$0xff] %v824_v16  ;;  %v764_v24 = vadd.f32 %v974_v57, %v763_v22 }
 0x21c   : > { %848 = vst [vmem:[%s1424_s7 + $0x50] sm:$0xff] %v832_v17  ;;  %v804_v25 = vadd.f32 %v974_v57, %v803_v23  ;;  %v827_v26 = vmax.f32 %v769_v20, 0.0 }
 0x21d   : > { %v835_v27 = vmax.f32 %v809_v21, 0.0  ;;  %v826_v28 = vmax.f32 %v764_v24, 0.0  ;;  %v1101_v30 = vpop.f32.mrb[6].mxu0 }
 0x21e   : > { %v834_v29 = vmax.f32 %v804_v25, 0.0  ;;  %v1113_v31 = vpop.f32.mrb[6].mxu1  ;;  %843 = vst [vmem:[%s1424_s7 + $0x28] sm:$0xff] %v827_v26  ;;  %v779_v32 = vadd.f32 %v1101_v30, %v974_v57  ;;  %v773_v34 = vpop.f32.mrb[7].mxu0 }
 0x21f   : > { %851 = vst [vmem:[%s1424_s7 + $0x68] sm:$0xff] %v835_v27  ;;  %v819_v33 = vadd.f32 %v1113_v31, %v974_v57  ;;  %v813_v35 = vpop.f32.mrb[7].mxu1  ;;  %842 = vst [vmem:[%s1424_s7 + $0x20] sm:$0xff] %v826_v28  ;;  %v774_v36 = vadd.f32 %v974_v57, %v773_v34 }
 0x220   : > { %850 = vst [vmem:[%s1424_s7 + $0x60] sm:$0xff] %v834_v29  ;;  %v814_v37 = vadd.f32 %v974_v57, %v813_v35  ;;  %v829_v38 = vmax.f32 %v779_v32, 0.0 }
 0x221   : > { %v837_v39 = vmax.f32 %v819_v33, 0.0  ;;  %v828_v40 = vmax.f32 %v774_v36, 0.0 }
 0x222   : > { %v836_v41 = vmax.f32 %v814_v37, 0.0  ;;  %845 = vst [vmem:[%s1424_s7 + $0x38] sm:$0xff] %v829_v38 }
 0x223   : > { %853 = vst [vmem:[%s1424_s7 + $0x78] sm:$0xff] %v837_v39  ;;  %844 = vst [vmem:[%s1424_s7 + $0x30] sm:$0xff] %v828_v40 }
 0x224   : > { %852 = vst [vmem:[%s1424_s7 + $0x70] sm:$0xff] %v836_v41 }
 0x225 PF: > { %s14_s21 = sadd.s32 1, %s1305_s21   ;;  %s1539_s15 = smov %s1285_s16 }
 0x226   : > { %p11_p0 = scmp.ge.s32.totalorder %s14_s21, 6   ;;  %s1540_s16 = smov %s1384_s28 }
 0x227   : > { %s1541_s17 = smov %s1297_s19  ;;  %s1542_s18 = smov %s1301_s20 }
 0x228   : > { %s1543_s19 = smov %s1546_s22  ;;  %s1544_s20 = smov %s1550_s23 }
 0x229   :  { %13 = sbr.rel (!%p11_p0) target bundleno = 4 (0x4), region = 123 }

// kernel: classifier_forward.3
= control target key start
LH: loop header
LB: loop body
LE: loop exit
PB: predicated region body
PF: predicated region fallthrough
CT: control target
= control target key end

     0   :  { %s1097_s15 = smov 0   ;;  %s1099_s16 = smov 0   ;;  %s1304_s0 = inlined_call_operand.vmem [shape: bf16[256,256], index: 0, kind: input, shape index: {}]   ;;  %s1305_s1 = inlined_call_operand.vmem [shape: f32[1,256], index: 1, kind: input, shape index: {}]   ;;  %s1306_s2 = inlined_call_operand.vmem [shape: f32[1,128], index: 2, kind: input, shape index: {}]   ;;  %s1307_s3 = inlined_call_operand.vmem [shape: f32[1,128], index: 3, kind: input, shape index: {}]   ;;  %s1308_s4 = inlined_call_operand.vmem [shape: bf16[256,128], index: 4, kind: output, shape index: {}]  }
   0x1   :  { %s1101_s17 = smov 0   ;;  %s1103_s18 = smov 0  }
   0x2   :  { %s1105_s19 = smov 0   ;;  %s1107_s20 = smov 0  }
   0x3   :  { %s1109_s21 = smov 0  }
   0x4 LB: > { %s23_s22 = sadd.s32 1, %s1060_s19  ;;  %s26_s23 = sadd.s32 1, %s1064_s20  ;;  %s1068_s21 = sphi %s1109_s21, %s14_s21   ;;  %s1064_s20 = sphi %s1107_s20, %s1314_s20   ;;  %s1060_s19 = sphi %s1105_s19, %s1313_s19   ;;  %s1056_s18 = sphi %s1103_s18, %s1312_s18   ;;  %s1052_s17 = sphi %s1101_s17, %s1311_s17   ;;  %s1048_s16 = sphi %s1099_s16, %s1310_s16   ;;  %s1044_s15 = sphi %s1097_s15, %s1309_s15  }
   0x5   : > { %p24_p0 = scmp.ge.s32.totalorder %s23_s22, 2  ;;  %p42_p1 = scmp.ne.s32.totalorder %s1048_s16, %s1044_s15 }
   0x6   : > { %p43_p2 = scmp.eq.s32.totalorder %s1068_s21, 0  ;;  %s35_s27 = sadd.s32 1, %s1048_s16 }
   0x7   : > { %s1316_s22 = smov (%p24_p0, %s23_s22), 0  ;;  %s1318_s23 = smov (!%p24_p0, %s26_s23), %s1064_s20 }
   0x8   : > { %p44_p3 = por %p43_p2, %p42_p1  ;;  %p28_p4 = scmp.ge.s32.totalorder %s1318_s23, 2 }
   0x9   : > { %s31_s24 = ssub.s32 %s1060_s19, %s1316_s22  ;;  %p819_p6 = scmp.ge.s32.totalorder %s1068_s21, 4 }
   0xa   : > { %s1320_s23 = smov (%p28_p4, %s1318_s23), 0 }
   0xb   : > { %s30_s25 = ssub.s32 %s1064_s20, %s1320_s23  ;;  %168 = sbr.rel (%p819_p6) target bundleno = 34 (0x22), region = 24 }
   0xc   : > { %s32_s26 = sor.u32 %s31_s24, %s30_s25 }
   0xd   : > { %p33_p5 = scmp.eq.s32.totalorder %s32_s26, 0 }
   0xf   : > { %s1148_s28 = scalar_select %p33_p5, %s1048_s16, %s35_s27  }
  0x12   : > { %171 = sbr.rel (!%p44_p3) target bundleno = 34 (0x22), region = 28  ;;  %s173_s29 = sand.u32 (%p44_p3), 1, %s1048_s16  }
  0x13   : > { %s851_s30 = sshll.u32 (%p44_p3), %s1064_s20, 5  ;;  %s820_s5 = sshll.u32 (%p44_p3), %s173_s29, 6 }
  0x14   : > { %s178_s6 = sadd.s32 (%p44_p3), %s1060_s19, %s851_s30  ;;  %s175_s11 = scalar_lea.vmem (%p44_p3), [#allocation3], %s820_s5 }
  0x15   : > { %s823_s7 = sshll.u32 (%p44_p3), %s178_s6, 2 }
  0x16   : > { %s1157_s10 = scalar_lea.vmem (%p44_p3), %s1304_s0, %s823_s7 }
  0x17   : > { %v196_v0 = vld [vmem:[%s1157_s10] sm:$0xf] (%p44_p3)  ;;  %v198_v1 = vld [vmem:[%s1157_s10 + $0x8] sm:$0xf] (%p44_p3)  ;;  %v200_v2 = vld [vmem:[%s1157_s10 + $0x10] sm:$0xf] (%p44_p3) }
  0x18   : > { %197 = vst [vmem:[%s175_s11] sm:$0xf] (%p44_p3), %v196_v0  ;;  %199 = vst [vmem:[%s175_s11 + $0x4] sm:$0xf] (%p44_p3), %v198_v1  ;;  %v202_v3 = vld [vmem:[%s1157_s10 + $0x18] sm:$0xf] (%p44_p3) }
  0x19   : > { %201 = vst [vmem:[%s175_s11 + $0x8] sm:$0xf] %v200_v2  ;;  %v204_v4 = vld [vmem:[%s1157_s10 + $0x20] sm:$0xf]  ;;  %v206_v5 = vld [vmem:[%s1157_s10 + $0x28] sm:$0xf] }
  0x1a   : > { %203 = vst [vmem:[%s175_s11 + $0xc] sm:$0xf] %v202_v3  ;;  %205 = vst [vmem:[%s175_s11 + $0x10] sm:$0xf] %v204_v4  ;;  %v208_v6 = vld [vmem:[%s1157_s10 + $0x30] sm:$0xf] }
  0x1b   : > { %207 = vst [vmem:[%s175_s11 + $0x14] sm:$0xf] %v206_v5  ;;  %v210_v7 = vld [vmem:[%s1157_s10 + $0x38] sm:$0xf]  ;;  %v212_v8 = vld [vmem:[%s1157_s10 + $0x40] sm:$0xf] }
  0x1c   : > { %209 = vst [vmem:[%s175_s11 + $0x18] sm:$0xf] %v208_v6  ;;  %211 = vst [vmem:[%s175_s11 + $0x1c] sm:$0xf] %v210_v7  ;;  %v214_v9 = vld [vmem:[%s1157_s10 + $0x48] sm:$0xf] }
  0x1d   : > { %213 = vst [vmem:[%s175_s11 + $0x20] sm:$0xf] %v212_v8  ;;  %v216_v10 = vld [vmem:[%s1157_s10 + $0x50] sm:$0xf]  ;;  %v218_v11 = vld [vmem:[%s1157_s10 + $0x58] sm:$0xf] }
  0x1e   : > { %215 = vst [vmem:[%s175_s11 + $0x24] sm:$0xf] %v214_v9  ;;  %217 = vst [vmem:[%s175_s11 + $0x28] sm:$0xf] %v216_v10  ;;  %v220_v12 = vld [vmem:[%s1157_s10 + $0x60] sm:$0xf] }
  0x1f   : > { %219 = vst [vmem:[%s175_s11 + $0x2c] sm:$0xf] %v218_v11  ;;  %v222_v13 = vld [vmem:[%s1157_s10 + $0x68] sm:$0xf]  ;;  %v224_v14 = vld [vmem:[%s1157_s10 + $0x70] sm:$0xf] }
  0x20   : > { %221 = vst [vmem:[%s175_s11 + $0x30] sm:$0xf] %v220_v12  ;;  %223 = vst [vmem:[%s175_s11 + $0x34] sm:$0xf] %v222_v13  ;;  %v226_v15 = vld [vmem:[%s1157_s10 + $0x78] sm:$0xf] }
  0x21   : > { %225 = vst [vmem:[%s175_s11 + $0x38] sm:$0xf] %v224_v14  ;;  %227 = vst [vmem:[%s175_s11 + $0x3c] sm:$0xf] %v226_v15 }
  0x22 PF: > { %p824_p7 = scmp.ge.s32.totalorder %s1068_s21, 1  ;;  %p287_p8 = scmp.lt.s32.totalorder %s1068_s21, 5 }
  0x24   : > { %p288_p9 = pnand %p824_p7, %p287_p8 }
  0x25   : > { %s294_s12 = sand.u32 (!%p288_p9), 1, %s1044_s15   ;;  %p323_p10 = scmp.lt.s32.totalorder (!%p288_p9), %s1052_s17, 1 }
  0x26   : > { %291 = sbr.rel (%p288_p9) target bundleno = 379 (0x17b), region = 73  ;;  %s825_s13 = sshll.u32 (!%p288_p9), %s294_s12, 6 }
  0x27   : > { %s826_s14 = sshll.u32 (!%p288_p9), %s1056_s18, 4  ;;  %s1189_s7 = scalar_lea.vmem (!%p288_p9), [#allocation3], %s825_s13 }
  0x28   : > { %p327_p11 = scmp.lt.s32.totalorder (!%p288_p9), %s826_s14, 31  ;;  %p828_p12 = scmp.ne.s32.totalorder (!%p288_p9), %s1052_s17, 0 }
  0x2d   : > { %s324_s24 = scalar_select %p323_p10, %s1052_s17, 1 }
  0x2e   : > { %s1322_s14 = smov (!%p327_p11, %s826_s14), 31  ;;  %335 = sbr.rel (%p828_p12) target bundleno = 56 (0x38), region = 81 }
  0x2f   : > { %s325_s27 = scalar_lea.vmem %s1305_s1, %s324_s24  ;;  %s827_s29 = sshll.u32 %s1322_s14, 2  ;;  %vm336_vm0 = vcmask (!%p828_p12), 7168   ;;  %v1070_v16 = vmov (!%p828_p12), 0.0  }
  0x30   : > { %s1187_s6 = scalar_lea.vmem %s1308_s4, %s827_s29  ;;  %337 = vst.msk [vmem:[#allocation2] sm:$0xff] (!%p828_p12), %vm336_vm0, %v1070_v16  ;;  %338 = vst.msk [vmem:[#allocation2 + $0x8] sm:$0xff] (!%p828_p12), %vm336_vm0, %v1070_v16 }
  0x31   : > { %339 = vst.msk [vmem:[#allocation2 + $0x10] sm:$0xff] (!%p828_p12), %vm336_vm0, %v1070_v16  ;;  %340 = vst.msk [vmem:[#allocation2 + $0x18] sm:$0xff] (!%p828_p12), %vm336_vm0, %v1070_v16 }
  0x32   : > { %341 = vst.msk [vmem:[#allocation2 + $0x20] sm:$0xff] (!%p828_p12), %vm336_vm0, %v1070_v16  ;;  %342 = vst.msk [vmem:[#allocation2 + $0x28] sm:$0xff] (!%p828_p12), %vm336_vm0, %v1070_v16 }
  0x33   : > { %343 = vst.msk [vmem:[#allocation2 + $0x30] sm:$0xff] (!%p828_p12), %vm336_vm0, %v1070_v16  ;;  %344 = vst.msk [vmem:[#allocation2 + $0x38] sm:$0xff] (!%p828_p12), %vm336_vm0, %v1070_v16 }
  0x34   : > { %345 = vst.msk [vmem:[#allocation2 + $0x40] sm:$0xff] (!%p828_p12), %vm336_vm0, %v1070_v16  ;;  %346 = vst.msk [vmem:[#allocation2 + $0x48] sm:$0xff] (!%p828_p12), %vm336_vm0, %v1070_v16 }
  0x35   : > { %347 = vst.msk [vmem:[#allocation2 + $0x50] sm:$0xff] %vm336_vm0, %v1070_v16  ;;  %348 = vst.msk [vmem:[#allocation2 + $0x58] sm:$0xff] %vm336_vm0, %v1070_v16 }
  0x36   : > { %349 = vst.msk [vmem:[#allocation2 + $0x60] sm:$0xff] %vm336_vm0, %v1070_v16  ;;  %350 = vst.msk [vmem:[#allocation2 + $0x68] sm:$0xff] %vm336_vm0, %v1070_v16 }
  0x37   : > { %351 = vst.msk [vmem:[#allocation2 + $0x70] sm:$0xff] %vm336_vm0, %v1070_v16  ;;  %352 = vst.msk [vmem:[#allocation2 + $0x78] sm:$0xff] %vm336_vm0, %v1070_v16 }
  0x38 PF: > { %v940_v17 = vld [vmem:[%s1189_s7 + $0x8] sm:$0xff]   ;;  %v829_v18 = vld [vmem:[%s325_s27] ss:$0 sm:$0xff]  ;;  %v941_v24 = vld [vmem:[%s1189_s7 + $0x10] sm:$0xff]   ;;  %vm472_vm1 = vcmask 7168   ;;  %p830_p13 = scmp.ne.s32.totalorder %s1052_s17, 1 }
  0x39   : > { %v869_v19 = vld [vmem:[%s1189_s7] sm:$0xff]   ;;  %v874_v20 = vunpack.c.l.bf16 %v940_v17  ;;  %v875_v22 = vunpack.c.h.bf16 %v940_v17  ;;  %v879_v29 = vunpack.c.h.bf16 %v941_v24  ;;  %v878_v30 = vunpack.c.l.bf16 %v941_v24  ;;  %v942_v31 = vld [vmem:[%s1189_s7 + $0x18] sm:$0xff]   ;;  %v944_v41 = vld [vmem:[%s1189_s7 + $0x28] sm:$0xff]  }
  0x3a   : > { %v870_v21 = vunpack.c.l.bf16 %v869_v19  ;;  %v871_v23 = vunpack.c.h.bf16 %v869_v19  ;;  %v883_v34 = vunpack.c.h.bf16 %v942_v31  ;;  %v882_v35 = vunpack.c.l.bf16 %v942_v31  ;;  %v943_v36 = vld [vmem:[%s1189_s7 + $0x20] sm:$0xff]   ;;  %v945_v46 = vld [vmem:[%s1189_s7 + $0x30] sm:$0xff]   ;;  %v946_v51 = vld [vmem:[%s1189_s7 + $0x38] sm:$0xff]  }
  0x3b   : > { %v410_v25 = vmul.f32 %v874_v20, %v829_v18  ;;  %v411_v27 = vmul.f32 %v875_v22, %v829_v18  ;;  %v413_v32 = vmul.f32 %v879_v29, %v829_v18  ;;  %v412_v33 = vmul.f32 %v878_v30, %v829_v18  ;;  %v388_v58 = vld [vmem:[#allocation2 + $0x10] sm:$0xff]  ;;  %v386_v59 = vld [vmem:[#allocation2] sm:$0xff]  ;;  %v389_v0 = vld [vmem:[#allocation2 + $0x18] sm:$0xff] }
  0x3c   : > { %v408_v26 = vmul.f32 %v870_v21, %v829_v18  ;;  %v409_v28 = vmul.f32 %v871_v23, %v829_v18  ;;  %v415_v37 = vmul.f32 %v883_v34, %v829_v18  ;;  %v414_v38 = vmul.f32 %v882_v35, %v829_v18  ;;  %v387_v1 = vld [vmem:[#allocation2 + $0x8] sm:$0xff]  ;;  %v390_v7 = vld [vmem:[#allocation2 + $0x20] sm:$0xff] }
  0x3d   : > { %428 = vadd.xlane.f32.xlu1 %v410_v25  ;;  %v887_v39 = vunpack.c.h.bf16 %v943_v36  ;;  %v886_v40 = vunpack.c.l.bf16 %v943_v36  ;;  %v891_v44 = vunpack.c.h.bf16 %v944_v41  ;;  %v890_v45 = vunpack.c.l.bf16 %v944_v41  ;;  %v391_v6 = vld [vmem:[#allocation2 + $0x28] sm:$0xff]  ;;  %v393_v12 = vld [vmem:[#allocation2 + $0x38] sm:$0xff]  ;;  %v392_v13 = vld [vmem:[#allocation2 + $0x30] sm:$0xff] }
  0x3e   : > { %424 = vadd.xlane.f32.xlu0 %v408_v26  ;;  %v895_v49 = vunpack.c.h.bf16 %v945_v46  ;;  %v894_v50 = vunpack.c.l.bf16 %v945_v46  ;;  %v899_v54 = vunpack.c.h.bf16 %v946_v51  ;;  %v898_v55 = vunpack.c.l.bf16 %v946_v51  ;;  %v394_v19 = vld [vmem:[#allocation2 + $0x40] sm:$0xff]  ;;  %v396_v25 = vld [vmem:[#allocation2 + $0x50] sm:$0xff]  ;;  %v399_v30 = vld [vmem:[#allocation2 + $0x68] sm:$0xff] }
  0x3f   : > { %v417_v42 = vmul.f32 %v887_v39, %v829_v18  ;;  %v416_v43 = vmul.f32 %v886_v40, %v829_v18  ;;  %v419_v47 = vmul.f32 %v891_v44, %v829_v18  ;;  %v418_v48 = vmul.f32 %v890_v45, %v829_v18  ;;  %v397_v24 = vld [vmem:[#allocation2 + $0x58] sm:$0xff]  ;;  %v398_v31 = vld [vmem:[#allocation2 + $0x60] sm:$0xff] }
  0x40   : > { %v421_v52 = vmul.f32 %v895_v49, %v829_v18  ;;  %v420_v53 = vmul.f32 %v894_v50, %v829_v18  ;;  %v423_v56 = vmul.f32 %v899_v54, %v829_v18  ;;  %v422_v57 = vmul.f32 %v898_v55, %v829_v18  ;;  %v395_v18 = vld [vmem:[#allocation2 + $0x48] sm:$0xff]  ;;  %v401_v36 = vld [vmem:[#allocation2 + $0x78] sm:$0xff] }
  0x41   : > { %430 = vadd.xlane.f32.xlu1 %v411_v27  ;;  %v1071_v44 = vmov (!%p830_p13), 0  }
  0x42   : > { %426 = vadd.xlane.f32.xlu0 %v409_v28  ;;  %1013 = vset.pattern.permute.xlu1 (!%p830_p13), %v1071_v44 }
  0x43   : > { %1012 = vset.pattern.permute.xlu0 (!%p830_p13), %v1071_v44 }
  0x45   : > { %434 = vadd.xlane.f32.xlu1 %v413_v32 }
  0x46   : > { %432 = vadd.xlane.f32.xlu0 %v412_v33 }
  0x49   : > { %438 = vadd.xlane.f32.xlu1 %v415_v37  ;;  %v400_v37 = vld [vmem:[#allocation2 + $0x70] sm:$0xff] }
  0x4a   : > { %436 = vadd.xlane.f32.xlu0 %v414_v38 }
  0x4d   : > { %442 = vadd.xlane.f32.xlu1 %v417_v42 }
  0x4e   : > { %440 = vadd.xlane.f32.xlu0 %v416_v43 }
  0x51   : > { %446 = vadd.xlane.f32.xlu1 %v419_v47 }
  0x52   : > { %444 = vadd.xlane.f32.xlu0 %v418_v48 }
  0x55   : > { %450 = vadd.xlane.f32.xlu1 %v421_v52 }
  0x56   : > { %448 = vadd.xlane.f32.xlu0 %v420_v53 }
  0x59   : > { %454 = vadd.xlane.f32.xlu1 %v423_v56 }
  0x5a   : > { %452 = vadd.xlane.f32.xlu0 %v422_v57 }
  0xca   : > { %v429_v60 = vpop.xlane.xlu1 %428 }
  0xcb   : > { %v425_v61 = vpop.xlane.xlu0 %424  ;;  %v458_v62 = vadd.f32 %v429_v60, %v388_v58 }
  0xcc   : > { %v456_v63 = vadd.f32 %v425_v61, %v386_v59  ;;  %v1236_v59 = vld [vmem:[%s1306_s2] ss:$0 sm:$0xff] (!%p830_p13) }
  0xcd   : > { %475 = vst.msk [vmem:[#allocation2 + $0x10] sm:$0xff] %vm472_vm1, %v458_v62  ;;  %v1241_v62 = vld [vmem:[%s1307_s3] ss:$0 sm:$0xff] (!%p830_p13) }
  0xce   : > { %473 = vst.msk [vmem:[#allocation2] sm:$0xff] %vm472_vm1, %v456_v63  ;;  %v431_v2 = vpop.xlane.xlu1 %430 }
  0xcf   : > { %v427_v3 = vpop.xlane.xlu0 %426  ;;  %v459_v4 = vadd.f32 %v431_v2, %v389_v0 }
  0xd0   : > { %v457_v5 = vadd.f32 %v427_v3, %v387_v1 }
  0xd1   : > { %476 = vst.msk [vmem:[#allocation2 + $0x18] sm:$0xff] %vm472_vm1, %v459_v4 }
  0xd2   : > { %474 = vst.msk [vmem:[#allocation2 + $0x8] sm:$0xff] %vm472_vm1, %v457_v5  ;;  %v435_v8 = vpop.xlane.xlu1 %434 }
  0xd3   : > { %v433_v9 = vpop.xlane.xlu0 %432  ;;  %v461_v10 = vadd.f32 %v435_v8, %v391_v6 }
  0xd4   : > { %v460_v11 = vadd.f32 %v433_v9, %v390_v7  ;;  %v495_v42 = vld [vmem:[#allocation2 + $0x10] sm:$0xff] (!%p830_p13) }
  0xd5   : > { %478 = vst.msk [vmem:[#allocation2 + $0x28] sm:$0xff] %vm472_vm1, %v461_v10  ;;  %v493_v43 = vld [vmem:[#allocation2] sm:$0xff] (!%p830_p13)  ;;  %522 = vperm.xlu1 (!%p830_p13), %1013, %v495_v42  }
  0xd6   : > { %477 = vst.msk [vmem:[#allocation2 + $0x20] sm:$0xff] %vm472_vm1, %v460_v11  ;;  %v439_v14 = vpop.xlane.xlu1 %438  ;;  %512 = vperm.xlu0 (!%p830_p13), %1012, %v493_v43  }
  0xd7   : > { %v437_v15 = vpop.xlane.xlu0 %436  ;;  %v463_v16 = vadd.f32 %v439_v14, %v393_v12 }
  0xd8   : > { %v462_v17 = vadd.f32 %v437_v15, %v392_v13  ;;  %v496_v45 = vld [vmem:[#allocation2 + $0x18] sm:$0xff] (!%p830_p13) }
  0xd9   : > { %480 = vst.msk [vmem:[#allocation2 + $0x38] sm:$0xff] %vm472_vm1, %v463_v16  ;;  %v494_v46 = vld [vmem:[#allocation2 + $0x8] sm:$0xff] (!%p830_p13)  ;;  %527 = vperm.xlu1 (!%p830_p13), %1013, %v496_v45  }
  0xda   : > { %479 = vst.msk [vmem:[#allocation2 + $0x30] sm:$0xff] %vm472_vm1, %v462_v17  ;;  %v443_v20 = vpop.xlane.xlu1 %442  ;;  %517 = vperm.xlu0 (!%p830_p13), %1012, %v494_v46  }
  0xdb   : > { %v441_v21 = vpop.xlane.xlu0 %440  ;;  %v465_v22 = vadd.f32 %v443_v20, %v395_v18 }
  0xdc   : > { %v464_v23 = vadd.f32 %v441_v21, %v394_v19  ;;  %v498_v47 = vld [vmem:[#allocation2 + $0x28] sm:$0xff] (!%p830_p13) }
  0xdd   : > { %482 = vst.msk [vmem:[#allocation2 + $0x48] sm:$0xff] %vm472_vm1, %v465_v22  ;;  %v497_v48 = vld [vmem:[#allocation2 + $0x20] sm:$0xff] (!%p830_p13)  ;;  %537 = vperm.xlu1 (!%p830_p13), %1013, %v498_v47  }
  0xde   : > { %481 = vst.msk [vmem:[#allocation2 + $0x40] sm:$0xff] %vm472_vm1, %v464_v23  ;;  %v447_v26 = vpop.xlane.xlu1 %446  ;;  %532 = vperm.xlu0 (!%p830_p13), %1012, %v497_v48  }
  0xdf   : > { %v445_v27 = vpop.xlane.xlu0 %444  ;;  %v467_v28 = vadd.f32 %v447_v26, %v397_v24 }
  0xe0   : > { %v466_v29 = vadd.f32 %v445_v27, %v396_v25  ;;  %v500_v49 = vld [vmem:[#allocation2 + $0x38] sm:$0xff] (!%p830_p13) }
  0xe1   : > { %484 = vst.msk [vmem:[#allocation2 + $0x58] sm:$0xff] %vm472_vm1, %v467_v28  ;;  %v499_v50 = vld [vmem:[#allocation2 + $0x30] sm:$0xff] (!%p830_p13)  ;;  %547 = vperm.xlu1 (!%p830_p13), %1013, %v500_v49  }
  0xe2   : > { %483 = vst.msk [vmem:[#allocation2 + $0x50] sm:$0xff] %vm472_vm1, %v466_v29  ;;  %v451_v32 = vpop.xlane.xlu1 %450  ;;  %542 = vperm.xlu0 (!%p830_p13), %1012, %v499_v50  }
  0xe3   : > { %v449_v33 = vpop.xlane.xlu0 %448  ;;  %v469_v34 = vadd.f32 %v451_v32, %v399_v30 }
  0xe4   : > { %v468_v35 = vadd.f32 %v449_v33, %v398_v31  ;;  %492 = sbr.rel (%p830_p13) target bundleno = 379 (0x17b), region = 85  ;;  %v502_v51 = vld [vmem:[#allocation2 + $0x48] sm:$0xff] (!%p830_p13) }
  0xe5   : > { %486 = vst.msk [vmem:[#allocation2 + $0x68] sm:$0xff] %vm472_vm1, %v469_v34  ;;  %v501_v52 = vld [vmem:[#allocation2 + $0x40] sm:$0xff] (!%p830_p13)  ;;  %557 = vperm.xlu1 (!%p830_p13), %1013, %v502_v51  }
  0xe6   : > { %485 = vst.msk [vmem:[#allocation2 + $0x60] sm:$0xff] %vm472_vm1, %v468_v35  ;;  %v455_v38 = vpop.xlane.xlu1 %454  ;;  %552 = vperm.xlu0 (!%p830_p13), %1012, %v501_v52  }
  0xe7   : > { %v453_v39 = vpop.xlane.xlu0 %452  ;;  %v471_v40 = vadd.f32 %v455_v38, %v401_v36 }
  0xe8   : > { %v470_v41 = vadd.f32 %v453_v39, %v400_v37  ;;  %v504_v53 = vld [vmem:[#allocation2 + $0x58] sm:$0xff] (!%p830_p13) }
  0xe9   : > { %488 = vst.msk [vmem:[#allocation2 + $0x78] sm:$0xff] %vm472_vm1, %v471_v40  ;;  %v503_v54 = vld [vmem:[#allocation2 + $0x50] sm:$0xff] (!%p830_p13)  ;;  %567 = vperm.xlu1 (!%p830_p13), %1013, %v504_v53  }
  0xea   : > { %487 = vst.msk [vmem:[#allocation2 + $0x70] sm:$0xff] %vm472_vm1, %v470_v41  ;;  %562 = vperm.xlu0 (!%p830_p13), %1012, %v503_v54  }
  0xec   : > { %v506_v55 = vld [vmem:[#allocation2 + $0x68] sm:$0xff] }
  0xed   : > { %v505_v56 = vld [vmem:[#allocation2 + $0x60] sm:$0xff]  ;;  %577 = vperm.xlu1 %1013, %v506_v55  }
  0xee   : > { %572 = vperm.xlu0 %1012, %v505_v56  }
  0xf0   : > { %v508_v57 = vld [vmem:[#allocation2 + $0x78] sm:$0xff] }
  0xf1   : > { %v507_v58 = vld [vmem:[#allocation2 + $0x70] sm:$0xff]  ;;  %587 = vperm.xlu1 %1013, %v508_v57  }
  0xf2   : > { %582 = vperm.xlu0 %1012, %v507_v58  }
 0x154   : > { %v523_v60 = vpop.permute.xlu1 %522 }
 0x155   : > { %v513_v61 = vpop.permute.xlu0 %512  ;;  %v598_v63 = vmul.f32 %v1236_v59, %v523_v60 }
 0x156   : > { %v596_v0 = vmul.f32 %v1236_v59, %v513_v61 }
 0x157   : > { %v621_v1 = vadd.f32 %v1241_v62, %v598_v63 }
 0x158   : > { %v619_v2 = vadd.f32 %v1241_v62, %v596_v0  ;;  %v528_v3 = vpop.permute.xlu1 %527 }
 0x159   : > { %v518_v4 = vpop.permute.xlu0 %517  ;;  %v599_v5 = vmul.f32 %v1236_v59, %v528_v3  ;;  %v637_v9 = vmax.f32 %v621_v1, 0.0 }
 0x15a   : > { %v597_v6 = vmul.f32 %v1236_v59, %v518_v4  ;;  %v635_v10 = vmax.f32 %v619_v2, 0.0 }
 0x15b   : > { %v622_v7 = vadd.f32 %v1241_v62, %v599_v5 }
 0x15c   : > { %v620_v8 = vadd.f32 %v1241_v62, %v597_v6  ;;  %v538_v11 = vpop.permute.xlu1 %537 }
 0x15d   : > { %v533_v12 = vpop.permute.xlu0 %532  ;;  %v638_v13 = vmax.f32 %v622_v7, 0.0  ;;  %v601_v15 = vmul.f32 %v1236_v59, %v538_v11 }
 0x15e   : > { %v636_v14 = vmax.f32 %v620_v8, 0.0  ;;  %v600_v16 = vmul.f32 %v1236_v59, %v533_v12 }
 0x15f   : > { %v908_v17 = vpack.c.bf16 %v638_v13, %v637_v9  ;;  %v624_v19 = vadd.f32 %v1241_v62, %v601_v15 }
 0x160   : > { %v903_v18 = vpack.c.bf16 %v636_v14, %v635_v10  ;;  %v623_v20 = vadd.f32 %v1241_v62, %v600_v16  ;;  %v548_v21 = vpop.permute.xlu1 %547 }
 0x161   : > { %v543_v22 = vpop.permute.xlu0 %542  ;;  %947 = vst [vmem:[%s1187_s6 + $0x8] sm:$0xff] %v908_v17   ;;  %v640_v23 = vmax.f32 %v624_v19, 0.0  ;;  %v603_v25 = vmul.f32 %v1236_v59, %v548_v21 }
 0x162   : > { %904 = vst [vmem:[%s1187_s6] sm:$0xff] %v903_v18   ;;  %v639_v24 = vmax.f32 %v623_v20, 0.0  ;;  %v602_v26 = vmul.f32 %v1236_v59, %v543_v22 }
 0x163   : > { %v626_v28 = vadd.f32 %v1241_v62, %v603_v25 }
 0x164   : > { %v913_v27 = vpack.c.bf16 %v640_v23, %v639_v24  ;;  %v625_v29 = vadd.f32 %v1241_v62, %v602_v26  ;;  %v558_v30 = vpop.permute.xlu1 %557 }
 0x165   : > { %v553_v31 = vpop.permute.xlu0 %552  ;;  %v642_v32 = vmax.f32 %v626_v28, 0.0  ;;  %v605_v34 = vmul.f32 %v1236_v59, %v558_v30 }
 0x166   : > { %948 = vst [vmem:[%s1187_s6 + $0x10] sm:$0xff] %v913_v27   ;;  %v641_v33 = vmax.f32 %v625_v29, 0.0  ;;  %v604_v35 = vmul.f32 %v1236_v59, %v553_v31 }
 0x167   : > { %v628_v37 = vadd.f32 %v1241_v62, %v605_v34 }
 0x168   : > { %v918_v36 = vpack.c.bf16 %v642_v32, %v641_v33  ;;  %v627_v38 = vadd.f32 %v1241_v62, %v604_v35  ;;  %v568_v39 = vpop.permute.xlu1 %567 }
 0x169   : > { %v563_v40 = vpop.permute.xlu0 %562  ;;  %v644_v41 = vmax.f32 %v628_v37, 0.0  ;;  %v607_v43 = vmul.f32 %v1236_v59, %v568_v39 }
 0x16a   : > { %949 = vst [vmem:[%s1187_s6 + $0x18] sm:$0xff] %v918_v36   ;;  %v643_v42 = vmax.f32 %v627_v38, 0.0  ;;  %v606_v44 = vmul.f32 %v1236_v59, %v563_v40 }
 0x16b   : > { %v630_v46 = vadd.f32 %v1241_v62, %v607_v43 }
 0x16c   : > { %v923_v45 = vpack.c.bf16 %v644_v41, %v643_v42  ;;  %v629_v47 = vadd.f32 %v1241_v62, %v606_v44  ;;  %v578_v48 = vpop.permute.xlu1 %577 }
 0x16d   : > { %v573_v49 = vpop.permute.xlu0 %572  ;;  %v646_v50 = vmax.f32 %v630_v46, 0.0  ;;  %v609_v52 = vmul.f32 %v1236_v59, %v578_v48 }
 0x16e   : > { %950 = vst [vmem:[%s1187_s6 + $0x20] sm:$0xff] %v923_v45   ;;  %v645_v51 = vmax.f32 %v629_v47, 0.0  ;;  %v608_v53 = vmul.f32 %v1236_v59, %v573_v49 }
 0x16f   : > { %v632_v55 = vadd.f32 %v1241_v62, %v609_v52 }
 0x170   : > { %v928_v54 = vpack.c.bf16 %v646_v50, %v645_v51  ;;  %v631_v56 = vadd.f32 %v1241_v62, %v608_v53  ;;  %v588_v57 = vpop.permute.xlu1 %587 }
 0x171   : > { %v583_v58 = vpop.permute.xlu0 %582  ;;  %v648_v60 = vmax.f32 %v632_v55, 0.0  ;;  %v611_v63 = vmul.f32 %v1236_v59, %v588_v57 }
 0x172   : > { %951 = vst [vmem:[%s1187_s6 + $0x28] sm:$0xff] %v928_v54   ;;  %v647_v61 = vmax.f32 %v631_v56, 0.0  ;;  %v610_v0 = vmul.f32 %v1236_v59, %v583_v58 }
 0x173   : > { %v634_v2 = vadd.f32 %v1241_v62, %v611_v63 }
 0x174   : > { %v933_v1 = vpack.c.bf16 %v648_v60, %v647_v61  ;;  %v633_v3 = vadd.f32 %v1241_v62, %v610_v0 }
 0x175   : > { %v650_v4 = vmax.f32 %v634_v2, 0.0 }
 0x176   : > { %952 = vst [vmem:[%s1187_s6 + $0x30] sm:$0xff] %v933_v1   ;;  %v649_v5 = vmax.f32 %v633_v3, 0.0 }
 0x178   : > { %v938_v6 = vpack.c.bf16 %v650_v4, %v649_v5 }
 0x17a   : > { %953 = vst [vmem:[%s1187_s6 + $0x38] sm:$0xff] %v938_v6  }
 0x17b PF: > { %s14_s21 = sadd.s32 1, %s1068_s21   ;;  %s1309_s15 = smov %s1048_s16 }
 0x17c   : > { %p11_p0 = scmp.ge.s32.totalorder %s14_s21, 6   ;;  %s1310_s16 = smov %s1148_s28 }
 0x17d   : > { %s1311_s17 = smov %s1060_s19  ;;  %s1312_s18 = smov %s1064_s20 }
 0x17e   : > { %s1313_s19 = smov %s1316_s22  ;;  %s1314_s20 = smov %s1320_s23 }
 0x17f   :  { %13 = sbr.rel (!%p11_p0) target bundleno = 4 (0x4), region = 123 }

</bundles_post_ra>
